<compile_context>
chip_gen: v6e
topology: v6e:2x2x1
jax: 0.10.0
libtpu: 0.0.40
codegen_flags: <defaults>
</compile_context>

<pallas_src>
import functools

import jax
import jax.numpy as jnp
from jax.experimental import pallas as pl
from jax.experimental.pallas import tpu as pltpu

_COMPUTE_DTYPE = jnp.bfloat16          # MXU-native; accumulation stays f32
_ACT_DTYPE = jnp.bfloat16              # activation storage dtype between kernels
# Safe on every generation (v7x physical VMEM is 64 MiB); raise to 64-96 MiB on v5e/v6e if tiles
# are enlarged.
_VMEM_LIMIT = 32 * 1024 * 1024


# ----------------------------------------------------------------------------- tiling helper
def _choose_tile(dim, target, align):
    """Largest tile <= target that is `align`-aligned and evenly divides dim (else full dim)."""
    if dim <= target:
        return dim
    t = (target // align) * align
    while t >= align:
        if dim % t == 0:
            return t
        t -= align
    return dim


# ----------------------------------------------------------------------------- tiled matmul
def _matmul_kernel(x_ref, w_ref, b_ref, o_ref, acc_ref, *, activation):
    @pl.when(pl.program_id(2) == 0)
    def _():
        acc_ref[...] = jnp.zeros_like(acc_ref)

    acc_ref[...] += jnp.dot(x_ref[...], w_ref[...], preferred_element_type=jnp.float32)

    @pl.when(pl.program_id(2) == pl.num_programs(2) - 1)
    def _():
        y = acc_ref[...] + b_ref[...]
        if activation == "gelu":
            # TODO(synk): HF BERT uses exact erf-GELU; tanh approximation used here.
            y = jax.nn.gelu(y, approximate=True)
        elif activation == "tanh":
            y = jnp.tanh(y)
        o_ref[...] = y.astype(o_ref.dtype)


def pallas_linear(x, w, b, activation=None, out_dtype=_ACT_DTYPE):
    """y = act(x @ w + b), bf16 inputs on the MXU, f32 accumulation."""
    M, K = x.shape
    _, N = w.shape
    tm = _choose_tile(M, 256, 8)
    tn = _choose_tile(N, 256, 128)
    tk = _choose_tile(K, 512, 128)
    grid = (M // tm, N // tn, K // tk)

    cost = pl.CostEstimate(
        flops=2 * M * N * K,
        transcendentals=M * N if activation else 0,
        bytes_accessed=(M * K + K * N) * 2 + M * N * jnp.dtype(out_dtype).itemsize,
    )
    return pl.pallas_call(
        functools.partial(_matmul_kernel, activation=activation),
        out_shape=jax.ShapeDtypeStruct((M, N), out_dtype),
        grid=grid,
        in_specs=[
            pl.BlockSpec((tm, tk), lambda i, j, k: (i, k)),
            pl.BlockSpec((tk, tn), lambda i, j, k: (k, j)),
            pl.BlockSpec((1, tn), lambda i, j, k: (0, j)),
        ],
        out_specs=pl.BlockSpec((tm, tn), lambda i, j, k: (i, j)),
        scratch_shapes=[pltpu.VMEM((tm, tn), jnp.float32)],
        compiler_params=pltpu.CompilerParams(
            dimension_semantics=("parallel", "parallel", "arbitrary"),
            vmem_limit_bytes=_VMEM_LIMIT),
        cost_estimate=cost,
    )(x.astype(_COMPUTE_DTYPE), w.astype(_COMPUTE_DTYPE),
      b.reshape(1, N).astype(jnp.float32))


# --------------------------------------------------------- matmul fused with residual + LayerNorm
def _matmul_res_ln_kernel(x_ref, w_ref, b_ref, r_ref, g_ref, bt_ref, o_ref, acc_ref, *, eps):
    @pl.when(pl.program_id(1) == 0)
    def _():
        acc_ref[...] = jnp.zeros_like(acc_ref)

    acc_ref[...] += jnp.dot(x_ref[...], w_ref[...], preferred_element_type=jnp.float32)

    @pl.when(pl.program_id(1) == pl.num_programs(1) - 1)
    def _():
        y = acc_ref[...] + b_ref[...] + r_ref[...].astype(jnp.float32)
        mu = jnp.mean(y, axis=-1, keepdims=True)
        var = jnp.mean((y - mu) ** 2, axis=-1, keepdims=True)
        inv = jax.lax.rsqrt(var + eps)
        o_ref[...] = ((y - mu) * inv * g_ref[...] + bt_ref[...]).astype(o_ref.dtype)


def pallas_linear_residual_layernorm(x, w, b, res, gamma, beta, eps=1e-12, out_dtype=_ACT_DTYPE):
    """LayerNorm(x @ w + b + res).  N (=hidden) is kept whole so LN stats see the full row."""
    M, K = x.shape
    _, N = w.shape
    tm = _choose_tile(M, 256, 8)
    tk = _choose_tile(K, 512, 128)
    grid = (M // tm, K // tk)

    return pl.pallas_call(
        functools.partial(_matmul_res_ln_kernel, eps=eps),
        out_shape=jax.ShapeDtypeStruct((M, N), out_dtype),
        grid=grid,
        in_specs=[
            pl.BlockSpec((tm, tk), lambda i, k: (i, k)),
            pl.BlockSpec((tk, N), lambda i, k: (k, 0)),
            pl.BlockSpec((1, N), lambda i, k: (0, 0)),
            pl.BlockSpec((tm, N), lambda i, k: (i, 0)),     # residual (loaded once per row tile)
            pl.BlockSpec((1, N), lambda i, k: (0, 0)),
            pl.BlockSpec((1, N), lambda i, k: (0, 0)),
        ],
        out_specs=pl.BlockSpec((tm, N), lambda i, k: (i, 0)),
        scratch_shapes=[pltpu.VMEM((tm, N), jnp.float32)],
        compiler_params=pltpu.CompilerParams(
            dimension_semantics=("parallel", "arbitrary"),
            vmem_limit_bytes=_VMEM_LIMIT),
        cost_estimate=pl.CostEstimate(flops=2 * M * N * K, transcendentals=0,
                                      bytes_accessed=(M * K + K * N + 2 * M * N) * 2),
    )(x.astype(_COMPUTE_DTYPE), w.astype(_COMPUTE_DTYPE),
      b.reshape(1, N).astype(jnp.float32), res,
      gamma.reshape(1, N).astype(jnp.float32), beta.reshape(1, N).astype(jnp.float32))


# ----------------------------------------------------------------------------- plain LayerNorm
def _layernorm_kernel(x_ref, g_ref, b_ref, o_ref, *, eps):
    x = x_ref[...].astype(jnp.float32)
    mu = jnp.mean(x, axis=-1, keepdims=True)
    var = jnp.mean((x - mu) ** 2, axis=-1, keepdims=True)
    inv = jax.lax.rsqrt(var + eps)
    o_ref[...] = ((x - mu) * inv * g_ref[...] + b_ref[...]).astype(o_ref.dtype)


def pallas_layernorm(x, gamma, beta, eps=1e-12, out_dtype=_ACT_DTYPE):
    M, H = x.shape
    tm = _choose_tile(M, 256, 8)
    return pl.pallas_call(
        functools.partial(_layernorm_kernel, eps=eps),
        out_shape=jax.ShapeDtypeStruct((M, H), out_dtype),
        grid=(M // tm,),
        in_specs=[pl.BlockSpec((tm, H), lambda i: (i, 0)),
                  pl.BlockSpec((1, H), lambda i: (0, 0)),
                  pl.BlockSpec((1, H), lambda i: (0, 0))],
        out_specs=pl.BlockSpec((tm, H), lambda i: (i, 0)),
        compiler_params=pltpu.CompilerParams(
            dimension_semantics=("parallel",), vmem_limit_bytes=_VMEM_LIMIT),
    )(x, gamma.reshape(1, H).astype(jnp.float32), beta.reshape(1, H).astype(jnp.float32))


# ----------------------------------------------------------------------------- flash attention
def _flash_attn_kernel(q_ref, k_ref, v_ref, m_ref, o_ref, m_sc, l_sc, acc_sc, *, scale):
    ki = pl.program_id(3)

    @pl.when(ki == 0)
    def _():
        m_sc[...] = jnp.full_like(m_sc, -1e30)
        l_sc[...] = jnp.zeros_like(l_sc)
        acc_sc[...] = jnp.zeros_like(acc_sc)

    q = q_ref[0, 0]                      # (tq, dh)
    k = k_ref[0, 0]                      # (tkv, dh)
    v = v_ref[0, 0]                      # (tkv, dh)

    s = jax.lax.dot_general(q, k, (((1,), (1,)), ((), ())),
                            preferred_element_type=jnp.float32) * scale
    s = s + m_ref[0]                     # (1, tkv) additive mask, broadcast over query rows

    m_prev = m_sc[...]
    m_new = jnp.maximum(m_prev, jnp.max(s, axis=-1, keepdims=True))
    alpha = jnp.exp(m_prev - m_new)
    p = jnp.exp(s - m_new)
    l_sc[...] = alpha * l_sc[...] + jnp.sum(p, axis=-1, keepdims=True)
    acc_sc[...] = alpha * acc_sc[...] + jax.lax.dot_general(
        p.astype(v.dtype), v, (((1,), (0,)), ((), ())), preferred_element_type=jnp.float32)
    m_sc[...] = m_new

    @pl.when(ki == pl.num_programs(3) - 1)
    def _():
        o_ref[0, 0] = (acc_sc[...] * pl.reciprocal(l_sc[...], approx=True)).astype(o_ref.dtype)


def pallas_flash_attention(q, k, v, mask, scale, out_dtype=_ACT_DTYPE):
    """q,k,v: (B, nH, S, dh); mask: (B, 1, S) additive.  Online-softmax, no SxS materialization."""
    B, nH, S, dh = q.shape
    tq = _choose_tile(S, 256, 8)
    tkv = _choose_tile(S, 256, 128)
    grid = (B, nH, S // tq, S // tkv)

    return pl.pallas_call(
        functools.partial(_flash_attn_kernel, scale=scale),
        out_shape=jax.ShapeDtypeStruct((B, nH, S, dh), out_dtype),
        grid=grid,
        in_specs=[
            pl.BlockSpec((1, 1, tq, dh), lambda b, h, qi, ki: (b, h, qi, 0)),
            pl.BlockSpec((1, 1, tkv, dh), lambda b, h, qi, ki: (b, h, ki, 0)),
            pl.BlockSpec((1, 1, tkv, dh), lambda b, h, qi, ki: (b, h, ki, 0)),
            # mask is shared across heads via the index_map (no per-head duplication in HBM)
            pl.BlockSpec((1, 1, tkv), lambda b, h, qi, ki: (b, 0, ki)),
        ],
        out_specs=pl.BlockSpec((1, 1, tq, dh), lambda b, h, qi, ki: (b, h, qi, 0)),
        scratch_shapes=[pltpu.VMEM((tq, 1), jnp.float32),
                        pltpu.VMEM((tq, 1), jnp.float32),
                        pltpu.VMEM((tq, dh), jnp.float32)],
        compiler_params=pltpu.CompilerParams(
            dimension_semantics=("parallel", "parallel", "parallel", "arbitrary"),
            vmem_limit_bytes=_VMEM_LIMIT),
    )(q.astype(_COMPUTE_DTYPE), k.astype(_COMPUTE_DTYPE), v.astype(_COMPUTE_DTYPE),
      mask.astype(jnp.float32))


# ----------------------------------------------------------------------------- MSE loss
def _mse_kernel(p_ref, l_ref, o_ref):
    d = p_ref[...].astype(jnp.float32) - l_ref[...]
    o_ref[...] = (jnp.sum(d * d, keepdims=True) / float(d.size)).astype(o_ref.dtype)


def pallas_mse(pred, labels):
    M, N = pred.shape
    out = pl.pallas_call(
        _mse_kernel,
        out_shape=jax.ShapeDtypeStruct((1, 1), jnp.float32),
        grid=(1,),
        in_specs=[pl.BlockSpec((M, N), lambda i: (0, 0)),
                  pl.BlockSpec((M, N), lambda i: (0, 0))],
        out_specs=pl.BlockSpec((1, 1), lambda i: (0, 0)),
        compiler_params=pltpu.CompilerParams(dimension_semantics=("arbitrary",)),
    )(pred, labels)
    return out[0, 0]


# ----------------------------------------------------------------------------- params
def init_params(key, *, vocab, max_pos, type_vocab, hidden, n_layers, n_heads, intermediate):
    keys = iter(jax.random.split(key, 8 + 8 * n_layers))

    def nrm(shape):
        return jax.random.normal(next(keys), shape, jnp.float32) * 0.02

    params = {
        "word_emb": nrm((vocab, hidden)),
        "pos_emb": nrm((max_pos, hidden)),
        "type_emb": nrm((type_vocab, hidden)),
        "emb_ln_g": jnp.ones((hidden,), jnp.float32),
        "emb_ln_b": jnp.zeros((hidden,), jnp.float32),
        "layers": [],
        "pool_w": nrm((hidden, hidden)),
        "pool_b": jnp.zeros((hidden,), jnp.float32),
        "cls_w": nrm((hidden, 1)),
        "cls_b": jnp.zeros((1,), jnp.float32),
    }
    for _ in range(n_layers):
        params["layers"].append({
            # fused QKV: columns ordered [Q | K | V], each packed as (n_heads, head_dim)
            "w_qkv": nrm((hidden, 3 * hidden)), "b_qkv": jnp.zeros((3 * hidden,), jnp.float32),
            "wo": nrm((hidden, hidden)), "bo": jnp.zeros((hidden,), jnp.float32),
            "ln1_g": jnp.ones((hidden,), jnp.float32), "ln1_b": jnp.zeros((hidden,), jnp.float32),
            "w1": nrm((hidden, intermediate)), "b1": jnp.zeros((intermediate,), jnp.float32),
            "w2": nrm((intermediate, hidden)), "b2": jnp.zeros((hidden,), jnp.float32),
            "ln2_g": jnp.ones((hidden,), jnp.float32), "ln2_b": jnp.zeros((hidden,), jnp.float32),
        })
    return params


# ----------------------------------------------------------------------------- forward
def stsb_forward(params, input_ids, attention_mask, token_type_ids, labels, *, n_heads):
    B, S = input_ids.shape
    H = params["word_emb"].shape[1]
    dh = H // n_heads
    scale = 1.0 / (dh ** 0.5)

    # --- embeddings (gathers are glue; LayerNorm runs in a Pallas kernel, no zeros residual) ---
    pos_ids = jnp.arange(S, dtype=jnp.int32)
    emb = (jnp.take(params["word_emb"], input_ids, axis=0)
           + jnp.take(params["pos_emb"], pos_ids, axis=0)[None, :, :]
           + jnp.take(params["type_emb"], token_type_ids, axis=0))
    x = pallas_layernorm(emb.reshape(B * S, H), params["emb_ln_g"], params["emb_ln_b"])
    # TODO(synk): dropout modeled in eval mode (identity), matching inference semantics.

    # additive attention mask, kept (B, 1, S); heads share it via the attention BlockSpec
    ext_mask = (1.0 - attention_mask.astype(jnp.float32))[:, None, :] * -10000.0

    for lyr in params["layers"]:
        # fused QKV projection: x read from HBM once
        qkv = pallas_linear(x, lyr["w_qkv"], lyr["b_qkv"])                 # (B*S, 3H)
        # TODO(synk): head split/merge done in JAX; could be folded into BlockSpec index_maps.
        qkv = qkv.reshape(B, S, 3, n_heads, dh).transpose(2, 0, 3, 1, 4)   # (3, B, nH, S, dh)
        attn = pallas_flash_attention(qkv[0], qkv[1], qkv[2], ext_mask, scale)  # (B, nH, S, dh)
        attn = attn.transpose(0, 2, 1, 3).reshape(B * S, H)

        # attention output projection fused with residual add + LayerNorm
        x = pallas_linear_residual_layernorm(attn, lyr["wo"], lyr["bo"], x,
                                             lyr["ln1_g"], lyr["ln1_b"])
        # FFN: up-projection + GELU, then down-projection fused with residual add + LayerNorm
        ff = pallas_linear(x, lyr["w1"], lyr["b1"], activation="gelu")
        x = pallas_linear_residual_layernorm(ff, lyr["w2"], lyr["b2"], x,
                                             lyr["ln2_g"], lyr["ln2_b"])

    # BERT pooler: tanh(Linear(hidden[:, 0, :])) -> bert(...)[1] (pooled_output)
    hidden = x.reshape(B, S, H)
    pooled = pallas_linear(hidden[:, 0, :], params["pool_w"], params["pool_b"], activation="tanh")
    # dropout (eval mode -> identity)
    logits = pallas_linear(pooled, params["cls_w"], params["cls_b"], out_dtype=jnp.float32)  # (B,1)
    loss = pallas_mse(logits, labels)                                      # scalar MSE
    return logits, loss


# ----------------------------------------------------------------------------- main
if __name__ == "__main__":
    # small synthetic BERT config
    VOCAB, MAX_POS, TYPE_VOCAB = 32, 16, 2
    HIDDEN, N_LAYERS, N_HEADS, INTER = 32, 2, 4, 64
    B, S = 2, 8

    root = jax.random.PRNGKey(0)
    k_param, k_ids, k_lbl = jax.random.split(root, 3)

    params = init_params(k_param, vocab=VOCAB, max_pos=MAX_POS, type_vocab=TYPE_VOCAB,
                         hidden=HIDDEN, n_layers=N_LAYERS, n_heads=N_HEADS,
                         intermediate=INTER)

    input_ids = jax.random.randint(k_ids, (B, S), 0, VOCAB, dtype=jnp.int32)
    attention_mask = jnp.ones((B, S), jnp.int32)
    token_type_ids = jnp.zeros((B, S), jnp.int32)
    labels = jax.random.uniform(k_lbl, (B, 1), jnp.float32) * 5.0  # STS-B scores in [0, 5]

    fwd = jax.jit(functools.partial(stsb_forward, n_heads=N_HEADS))
    logits, loss = fwd(params, input_ids, attention_mask, token_type_ids, labels)
    jax.block_until_ready((logits, loss))
    assert logits.shape == (B, 1) and loss.shape == ()
    assert bool(jnp.isfinite(loss))
    print("KERNEL_OK")
</pallas_src>

<mosaic_0001>
module attributes {stable_mosaic.version = 11 : i64} {
  func.func @_layernorm_kernel(%arg0: i32, %arg1: memref<16x32xf32, #tpu.memory_space<vmem>>, %arg2: memref<1x32xf32, #tpu.memory_space<vmem>>, %arg3: memref<1x32xf32, #tpu.memory_space<vmem>>, %arg4: memref<16x32xbf16, #tpu.memory_space<vmem>>) attributes {dimension_semantics = [#tpu.dimension_semantics<parallel>], iteration_bounds = array<i64: 1>, scalar_prefetch = 0 : i64, scratch_operands = 0 : i64, tpu.core_type = #tpu.core_type<tc>, window_params = [{transform_indices = @transform_0, window_bounds = array<i64: 16, 32>}, {pipeline_mode = #tpu.pipeline_mode<synchronous>, transform_indices = @transform_1, window_bounds = array<i64: 1, 32>}, {pipeline_mode = #tpu.pipeline_mode<synchronous>, transform_indices = @transform_2, window_bounds = array<i64: 1, 32>}, {transform_indices = @transform_3, window_bounds = array<i64: 16, 32>}]} {
    %c0 = arith.constant 0 : index
    %c0_0 = arith.constant 0 : index
    %0 = vector.load %arg1[%c0, %c0_0] : memref<16x32xf32, #tpu.memory_space<vmem>>, vector<16x32xf32>
    %cst = arith.constant dense<0.000000e+00> : vector<16xf32>
    %1 = vector.multi_reduction <add>, %0, %cst [1] : vector<16x32xf32> to vector<16xf32>
    %2 = vector.shape_cast %1 : vector<16xf32> to vector<16x1xf32>
    %cst_1 = arith.constant 3.200000e+01 : f32
    %3 = vector.broadcast %cst_1 : f32 to vector<16x1xf32>
    %4 = arith.divf %2, %3 : vector<16x1xf32>
    %5 = vector.broadcast %4 : vector<16x1xf32> to vector<16x32xf32>
    %6 = arith.subf %0, %5 : vector<16x32xf32>
    %7 = arith.mulf %6, %6 : vector<16x32xf32>
    %cst_2 = arith.constant dense<0.000000e+00> : vector<16xf32>
    %8 = vector.multi_reduction <add>, %7, %cst_2 [1] : vector<16x32xf32> to vector<16xf32>
    %9 = vector.shape_cast %8 : vector<16xf32> to vector<16x1xf32>
    %cst_3 = arith.constant 3.200000e+01 : f32
    %10 = vector.broadcast %cst_3 : f32 to vector<16x1xf32>
    %11 = arith.divf %9, %10 : vector<16x1xf32>
    %cst_4 = arith.constant 9.99999996E-13 : f32
    %12 = vector.broadcast %cst_4 : f32 to vector<16x1xf32>
    %13 = arith.addf %11, %12 : vector<16x1xf32>
    %14 = math.rsqrt %13 : vector<16x1xf32>
    %15 = vector.broadcast %4 : vector<16x1xf32> to vector<16x32xf32>
    %16 = arith.subf %0, %15 : vector<16x32xf32>
    %17 = vector.broadcast %14 : vector<16x1xf32> to vector<16x32xf32>
    %18 = arith.mulf %16, %17 : vector<16x32xf32>
    %c0_5 = arith.constant 0 : index
    %c0_6 = arith.constant 0 : index
    %19 = vector.load %arg2[%c0_5, %c0_6] : memref<1x32xf32, #tpu.memory_space<vmem>>, vector<1x32xf32>
    %20 = vector.broadcast %19 : vector<1x32xf32> to vector<16x32xf32>
    %21 = arith.mulf %18, %20 : vector<16x32xf32>
    %c0_7 = arith.constant 0 : index
    %c0_8 = arith.constant 0 : index
    %22 = vector.load %arg3[%c0_7, %c0_8] : memref<1x32xf32, #tpu.memory_space<vmem>>, vector<1x32xf32>
    %23 = vector.broadcast %22 : vector<1x32xf32> to vector<16x32xf32>
    %24 = arith.addf %21, %23 : vector<16x32xf32>
    %25 = arith.truncf %24 : vector<16x32xf32> to vector<16x32xbf16>
    %c0_9 = arith.constant 0 : index
    %c0_10 = arith.constant 0 : index
    %26 = vector.load %arg4[%c0_9, %c0_10] : memref<16x32xbf16, #tpu.memory_space<vmem>>, vector<16x32xbf16>
    tpu.vector_store %arg4[%c0_9, %c0_10], %25 {strides = array<i32>} : memref<16x32xbf16, #tpu.memory_space<vmem>>, vector<16x32xbf16>,
    return
  }
  func.func @transform_0(%arg0: i32) -> (i32, i32) {
    %c0_i32 = arith.constant 0 : i32
    %c0_i32_0 = arith.constant 0 : i32
    return %arg0, %c0_i32 : i32, i32
  }
  func.func @transform_1(%arg0: i32) -> (i32, i32) {
    %c0_i32 = arith.constant 0 : i32
    %c0_i32_0 = arith.constant 0 : i32
    %c0_i32_1 = arith.constant 0 : i32
    return %c0_i32, %c0_i32_0 : i32, i32
  }
  func.func @transform_2(%arg0: i32) -> (i32, i32) {
    %c0_i32 = arith.constant 0 : i32
    %c0_i32_0 = arith.constant 0 : i32
    %c0_i32_1 = arith.constant 0 : i32
    return %c0_i32, %c0_i32_0 : i32, i32
  }
  func.func @transform_3(%arg0: i32) -> (i32, i32) {
    %c0_i32 = arith.constant 0 : i32
    %c0_i32_0 = arith.constant 0 : i32
    return %arg0, %c0_i32 : i32, i32
  }
}

module attributes {stable_mosaic.version = 11 : i64} {
  func.func @_matmul_kernel(%arg0: i32, %arg1: i32, %arg2: i32, %arg3: memref<16x32xbf16, #tpu.memory_space<vmem>>, %arg4: memref<32x96xbf16, #tpu.memory_space<vmem>>, %arg5: memref<1x96xf32, #tpu.memory_space<vmem>>, %arg6: memref<16x96xbf16, #tpu.memory_space<vmem>>, %arg7: memref<16x96xf32, #tpu.memory_space<vmem>>) attributes {dimension_semantics = [#tpu.dimension_semantics<parallel>, #tpu.dimension_semantics<parallel>, #tpu.dimension_semantics<arbitrary>], iteration_bounds = array<i64: 1, 1, 1>, scalar_prefetch = 0 : i64, scratch_operands = 1 : i64, tpu.core_type = #tpu.core_type<tc>, window_params = [{transform_indices = @transform_0, window_bounds = array<i64: 16, 32>}, {transform_indices = @transform_1, window_bounds = array<i64: 32, 96>}, {transform_indices = @transform_2, window_bounds = array<i64: 1, 96>}, {transform_indices = @transform_3, window_bounds = array<i64: 16, 96>}]} {
    %c0_i32 = arith.constant 0 : i32
    %0 = arith.cmpi eq, %arg2, %c0_i32 : i32
    %1 = arith.extui %0 : i1 to i32
    %c0_i32_0 = arith.constant 0 : i32
    %2 = arith.cmpi ne, %1, %c0_i32_0 : i32
    scf.if %2 {
      %cst_10 = arith.constant 0.000000e+00 : f32
      %12 = vector.broadcast %cst_10 : f32 to vector<16x96xf32>
      %c0_11 = arith.constant 0 : index
      %c0_12 = arith.constant 0 : index
      %13 = vector.load %arg7[%c0_11, %c0_12] : memref<16x96xf32, #tpu.memory_space<vmem>>, vector<16x96xf32>
      tpu.vector_store %arg7[%c0_11, %c0_12], %12 {strides = array<i32>} : memref<16x96xf32, #tpu.memory_space<vmem>>, vector<16x96xf32>,
    } else {
    }
    %c0 = arith.constant 0 : index
    %c0_1 = arith.constant 0 : index
    %3 = vector.load %arg7[%c0, %c0_1] : memref<16x96xf32, #tpu.memory_space<vmem>>, vector<16x96xf32>
    %c0_2 = arith.constant 0 : index
    %c0_3 = arith.constant 0 : index
    %4 = vector.load %arg3[%c0_2, %c0_3] : memref<16x32xbf16, #tpu.memory_space<vmem>>, vector<16x32xbf16>
    %c0_4 = arith.constant 0 : index
    %c0_5 = arith.constant 0 : index
    %5 = vector.load %arg4[%c0_4, %c0_5] : memref<32x96xbf16, #tpu.memory_space<vmem>>, vector<32x96xbf16>
    %cst = arith.constant dense<0.000000e+00> : vector<16x96xf32>
    %6 = tpu.matmul %4, %5, %cst {dimension_numbers = #tpu.dot_dimension_numbers<[1], [0], [0], [1], [0, 0, 1, 1], [], []>} : vector<16x32xbf16>, vector<32x96xbf16>, vector<16x96xf32> -> vector<16x96xf32>
    %7 = arith.addf %3, %6 : vector<16x96xf32>
    %c0_6 = arith.constant 0 : index
    %c0_7 = arith.constant 0 : index
    %8 = vector.load %arg7[%c0_6, %c0_7] : memref<16x96xf32, #tpu.memory_space<vmem>>, vector<16x96xf32>
    tpu.vector_store %arg7[%c0_6, %c0_7], %7 {strides = array<i32>} : memref<16x96xf32, #tpu.memory_space<vmem>>, vector<16x96xf32>,
    %c0_i32_8 = arith.constant 0 : i32
    %9 = arith.cmpi eq, %arg2, %c0_i32_8 : i32
    %10 = arith.extui %9 : i1 to i32
    %c0_i32_9 = arith.constant 0 : i32
    %11 = arith.cmpi ne, %10, %c0_i32_9 : i32
    scf.if %11 {
      %c0_10 = arith.constant 0 : index
      %c0_11 = arith.constant 0 : index
      %12 = vector.load %arg7[%c0_10, %c0_11] : memref<16x96xf32, #tpu.memory_space<vmem>>, vector<16x96xf32>
      %c0_12 = arith.constant 0 : index
      %c0_13 = arith.constant 0 : index
      %13 = vector.load %arg5[%c0_12, %c0_13] : memref<1x96xf32, #tpu.memory_space<vmem>>, vector<1x96xf32>
      %14 = vector.broadcast %13 : vector<1x96xf32> to vector<16x96xf32>
      %15 = arith.addf %12, %14 : vector<16x96xf32>
      %16 = arith.truncf %15 : vector<16x96xf32> to vector<16x96xbf16>
      %c0_14 = arith.constant 0 : index
      %c0_15 = arith.constant 0 : index
      %17 = vector.load %arg6[%c0_14, %c0_15] : memref<16x96xbf16, #tpu.memory_space<vmem>>, vector<16x96xbf16>
      tpu.vector_store %arg6[%c0_14, %c0_15], %16 {strides = array<i32>} : memref<16x96xbf16, #tpu.memory_space<vmem>>, vector<16x96xbf16>,
    } else {
    }
    return
  }
  func.func @transform_0(%arg0: i32, %arg1: i32, %arg2: i32) -> (i32, i32) {
    %c0_i32 = arith.constant 0 : i32
    return %arg0, %arg2 : i32, i32
  }
  func.func @transform_1(%arg0: i32, %arg1: i32, %arg2: i32) -> (i32, i32) {
    %c0_i32 = arith.constant 0 : i32
    return %arg2, %arg1 : i32, i32
  }
  func.func @transform_2(%arg0: i32, %arg1: i32, %arg2: i32) -> (i32, i32) {
    %c0_i32 = arith.constant 0 : i32
    %c0_i32_0 = arith.constant 0 : i32
    return %c0_i32, %arg1 : i32, i32
  }
  func.func @transform_3(%arg0: i32, %arg1: i32, %arg2: i32) -> (i32, i32) {
    %c0_i32 = arith.constant 0 : i32
    return %arg0, %arg1 : i32, i32
  }
}

module attributes {stable_mosaic.version = 11 : i64} {
  func.func @_flash_attn_kernel(%arg0: i32, %arg1: i32, %arg2: i32, %arg3: i32, %arg4: memref<1x1x8x8xbf16, #tpu.memory_space<vmem>>, %arg5: memref<1x1x8x8xbf16, #tpu.memory_space<vmem>>, %arg6: memref<1x1x8x8xbf16, #tpu.memory_space<vmem>>, %arg7: memref<1x1x8xf32, #tpu.memory_space<vmem>>, %arg8: memref<1x1x8x8xbf16, #tpu.memory_space<vmem>>, %arg9: memref<8x1xf32, #tpu.memory_space<vmem>>, %arg10: memref<8x1xf32, #tpu.memory_space<vmem>>, %arg11: memref<8x8xf32, #tpu.memory_space<vmem>>) attributes {dimension_semantics = [#tpu.dimension_semantics<parallel>, #tpu.dimension_semantics<parallel>, #tpu.dimension_semantics<parallel>, #tpu.dimension_semantics<arbitrary>], iteration_bounds = array<i64: 2, 4, 1, 1>, scalar_prefetch = 0 : i64, scratch_operands = 3 : i64, tpu.core_type = #tpu.core_type<tc>, window_params = [{transform_indices = @transform_0, window_bounds = array<i64: 1, 1, 8, 8>}, {transform_indices = @transform_1, window_bounds = array<i64: 1, 1, 8, 8>}, {transform_indices = @transform_2, window_bounds = array<i64: 1, 1, 8, 8>}, {transform_indices = @transform_3, window_bounds = array<i64: 1, 1, 8>}, {transform_indices = @transform_4, window_bounds = array<i64: 1, 1, 8, 8>}]} {
    %c0_i32 = arith.constant 0 : i32
    %0 = arith.cmpi eq, %arg3, %c0_i32 : i32
    %1 = arith.extui %0 : i1 to i32
    %c0_i32_0 = arith.constant 0 : i32
    %2 = arith.cmpi ne, %1, %c0_i32_0 : i32
    scf.if %2 {
      %cst_33 = arith.constant -1.000000e+30 : f32
      %42 = vector.broadcast %cst_33 : f32 to vector<8x1xf32>
      %c0_34 = arith.constant 0 : index
      %c0_35 = arith.constant 0 : index
      %43 = vector.load %arg9[%c0_34, %c0_35] : memref<8x1xf32, #tpu.memory_space<vmem>>, vector<8x1xf32>
      tpu.vector_store %arg9[%c0_34, %c0_35], %42 {strides = array<i32>} : memref<8x1xf32, #tpu.memory_space<vmem>>, vector<8x1xf32>,
      %cst_36 = arith.constant 0.000000e+00 : f32
      %44 = vector.broadcast %cst_36 : f32 to vector<8x1xf32>
      %c0_37 = arith.constant 0 : index
      %c0_38 = arith.constant 0 : index
      %45 = vector.load %arg10[%c0_37, %c0_38] : memref<8x1xf32, #tpu.memory_space<vmem>>, vector<8x1xf32>
      tpu.vector_store %arg10[%c0_37, %c0_38], %44 {strides = array<i32>} : memref<8x1xf32, #tpu.memory_space<vmem>>, vector<8x1xf32>,
      %cst_39 = arith.constant 0.000000e+00 : f32
      %46 = vector.broadcast %cst_39 : f32 to vector<8x8xf32>
      %c0_40 = arith.constant 0 : index
      %c0_41 = arith.constant 0 : index
      %47 = vector.load %arg11[%c0_40, %c0_41] : memref<8x8xf32, #tpu.memory_space<vmem>>, vector<8x8xf32>
      tpu.vector_store %arg11[%c0_40, %c0_41], %46 {strides = array<i32>} : memref<8x8xf32, #tpu.memory_space<vmem>>, vector<8x8xf32>,
    } else {
    }
    %c0 = arith.constant 0 : index
    %c0_1 = arith.constant 0 : index
    %c0_2 = arith.constant 0 : index
    %c0_3 = arith.constant 0 : index
    %3 = vector.load %arg4[%c0, %c0_1, %c0_2, %c0_3] : memref<1x1x8x8xbf16, #tpu.memory_space<vmem>>, vector<1x1x8x8xbf16>
    %4 = vector.shape_cast %3 : vector<1x1x8x8xbf16> to vector<8x8xbf16>
    %c0_4 = arith.constant 0 : index
    %c0_5 = arith.constant 0 : index
    %c0_6 = arith.constant 0 : index
    %c0_7 = arith.constant 0 : index
    %5 = vector.load %arg5[%c0_4, %c0_5, %c0_6, %c0_7] : memref<1x1x8x8xbf16, #tpu.memory_space<vmem>>, vector<1x1x8x8xbf16>
    %6 = vector.shape_cast %5 : vector<1x1x8x8xbf16> to vector<8x8xbf16>
    %c0_8 = arith.constant 0 : index
    %c0_9 = arith.constant 0 : index
    %c0_10 = arith.constant 0 : index
    %c0_11 = arith.constant 0 : index
    %7 = vector.load %arg6[%c0_8, %c0_9, %c0_10, %c0_11] : memref<1x1x8x8xbf16, #tpu.memory_space<vmem>>, vector<1x1x8x8xbf16>
    %8 = vector.shape_cast %7 : vector<1x1x8x8xbf16> to vector<8x8xbf16>
    %cst = arith.constant dense<0.000000e+00> : vector<8x8xf32>
    %9 = tpu.matmul %4, %6, %cst {dimension_numbers = #tpu.dot_dimension_numbers<[1], [1], [0], [0], [0, 0, 1, 0], [], []>} : vector<8x8xbf16>, vector<8x8xbf16>, vector<8x8xf32> -> vector<8x8xf32>
    %cst_12 = arith.constant 0.353553385 : f32
    %10 = vector.broadcast %cst_12 : f32 to vector<8x8xf32>
    %11 = arith.mulf %9, %10 : vector<8x8xf32>
    %c0_13 = arith.constant 0 : index
    %c0_14 = arith.constant 0 : index
    %c0_15 = arith.constant 0 : index
    %12 = vector.load %arg7[%c0_13, %c0_14, %c0_15] : memref<1x1x8xf32, #tpu.memory_space<vmem>>, vector<1x1x8xf32>
    %13 = vector.shape_cast %12 : vector<1x1x8xf32> to vector<1x8xf32>
    %14 = vector.broadcast %13 : vector<1x8xf32> to vector<8x8xf32>
    %15 = arith.addf %11, %14 : vector<8x8xf32>
    %c0_16 = arith.constant 0 : index
    %c0_17 = arith.constant 0 : index
    %16 = vector.load %arg9[%c0_16, %c0_17] : memref<8x1xf32, #tpu.memory_space<vmem>>, vector<8x1xf32>
    %cst_18 = arith.constant dense<0xFF800000> : vector<8xf32>
    %17 = vector.multi_reduction <maximumf>, %15, %cst_18 [1] : vector<8x8xf32> to vector<8xf32>
    %18 = vector.shape_cast %17 : vector<8xf32> to vector<8x1xf32>
    %19 = arith.maximumf %16, %18 : vector<8x1xf32>
    %20 = arith.subf %16, %19 : vector<8x1xf32>
    %21 = math.exp %20 : vector<8x1xf32>
    %22 = vector.broadcast %19 : vector<8x1xf32> to vector<8x8xf32>
    %23 = arith.subf %15, %22 : vector<8x8xf32>
    %24 = math.exp %23 : vector<8x8xf32>
    %c0_19 = arith.constant 0 : index
    %c0_20 = arith.constant 0 : index
    %25 = vector.load %arg10[%c0_19, %c0_20] : memref<8x1xf32, #tpu.memory_space<vmem>>, vector<8x1xf32>
    %26 = arith.mulf %21, %25 : vector<8x1xf32>
    %cst_21 = arith.constant dense<0.000000e+00> : vector<8xf32>
    %27 = vector.multi_reduction <add>, %24, %cst_21 [1] : vector<8x8xf32> to vector<8xf32>
    %28 = vector.shape_cast %27 : vector<8xf32> to vector<8x1xf32>
    %29 = arith.addf %26, %28 : vector<8x1xf32>
    %c0_22 = arith.constant 0 : index
    %c0_23 = arith.constant 0 : index
    %30 = vector.load %arg10[%c0_22, %c0_23] : memref<8x1xf32, #tpu.memory_space<vmem>>, vector<8x1xf32>
    tpu.vector_store %arg10[%c0_22, %c0_23], %29 {strides = array<i32>} : memref<8x1xf32, #tpu.memory_space<vmem>>, vector<8x1xf32>,
    %c0_24 = arith.constant 0 : index
    %c0_25 = arith.constant 0 : index
    %31 = vector.load %arg11[%c0_24, %c0_25] : memref<8x8xf32, #tpu.memory_space<vmem>>, vector<8x8xf32>
    %32 = vector.broadcast %21 : vector<8x1xf32> to vector<8x8xf32>
    %33 = arith.mulf %32, %31 : vector<8x8xf32>
    %34 = arith.truncf %24 : vector<8x8xf32> to vector<8x8xbf16>
    %cst_26 = arith.constant dense<0.000000e+00> : vector<8x8xf32>
    %35 = tpu.matmul %34, %8, %cst_26 {dimension_numbers = #tpu.dot_dimension_numbers<[1], [0], [0], [1], [0, 0, 1, 1], [], []>} : vector<8x8xbf16>, vector<8x8xbf16>, vector<8x8xf32> -> vector<8x8xf32>
    %36 = arith.addf %33, %35 : vector<8x8xf32>
    %c0_27 = arith.constant 0 : index
    %c0_28 = arith.constant 0 : index
    %37 = vector.load %arg11[%c0_27, %c0_28] : memref<8x8xf32, #tpu.memory_space<vmem>>, vector<8x8xf32>
    tpu.vector_store %arg11[%c0_27, %c0_28], %36 {strides = array<i32>} : memref<8x8xf32, #tpu.memory_space<vmem>>, vector<8x8xf32>,
    %c0_29 = arith.constant 0 : index
    %c0_30 = arith.constant 0 : index
    %38 = vector.load %arg9[%c0_29, %c0_30] : memref<8x1xf32, #tpu.memory_space<vmem>>, vector<8x1xf32>
    tpu.vector_store %arg9[%c0_29, %c0_30], %19 {strides = array<i32>} : memref<8x1xf32, #tpu.memory_space<vmem>>, vector<8x1xf32>,
    %c0_i32_31 = arith.constant 0 : i32
    %39 = arith.cmpi eq, %arg3, %c0_i32_31 : i32
    %40 = arith.extui %39 : i1 to i32
    %c0_i32_32 = arith.constant 0 : i32
    %41 = arith.cmpi ne, %40, %c0_i32_32 : i32
    scf.if %41 {
      %c0_33 = arith.constant 0 : index
      %c0_34 = arith.constant 0 : index
      %42 = vector.load %arg11[%c0_33, %c0_34] : memref<8x8xf32, #tpu.memory_space<vmem>>, vector<8x8xf32>
      %c0_35 = arith.constant 0 : index
      %c0_36 = arith.constant 0 : index
      %43 = vector.load %arg10[%c0_35, %c0_36] : memref<8x1xf32, #tpu.memory_space<vmem>>, vector<8x1xf32>
      %44 = tpu.reciprocal %43 {approx = true} : vector<8x1xf32> -> vector<8x1xf32>
      %45 = vector.broadcast %44 : vector<8x1xf32> to vector<8x8xf32>
      %46 = arith.mulf %42, %45 : vector<8x8xf32>
      %47 = arith.truncf %46 : vector<8x8xf32> to vector<8x8xbf16>
      %c0_37 = arith.constant 0 : index
      %c0_38 = arith.constant 0 : index
      %c0_39 = arith.constant 0 : index
      %c0_40 = arith.constant 0 : index
      %48 = vector.load %arg8[%c0_37, %c0_38, %c0_39, %c0_40] : memref<1x1x8x8xbf16, #tpu.memory_space<vmem>>, vector<1x1x8x8xbf16>
      %49 = vector.shape_cast %48 : vector<1x1x8x8xbf16> to vector<8x8xbf16>
      %50 = vector.shape_cast %47 : vector<8x8xbf16> to vector<1x1x8x8xbf16>
      tpu.vector_store %arg8[%c0_37, %c0_38, %c0_39, %c0_40], %50 {strides = array<i32>} : memref<1x1x8x8xbf16, #tpu.memory_space<vmem>>, vector<1x1x8x8xbf16>,
    } else {
    }
    return
  }
  func.func @transform_0(%arg0: i32, %arg1: i32, %arg2: i32, %arg3: i32) -> (i32, i32, i32, i32) {
    %c0_i32 = arith.constant 0 : i32
    %c0_i32_0 = arith.constant 0 : i32
    return %arg0, %arg1, %arg2, %c0_i32 : i32, i32, i32, i32
  }
  func.func @transform_1(%arg0: i32, %arg1: i32, %arg2: i32, %arg3: i32) -> (i32, i32, i32, i32) {
    %c0_i32 = arith.constant 0 : i32
    %c0_i32_0 = arith.constant 0 : i32
    return %arg0, %arg1, %arg3, %c0_i32 : i32, i32, i32, i32
  }
  func.func @transform_2(%arg0: i32, %arg1: i32, %arg2: i32, %arg3: i32) -> (i32, i32, i32, i32) {
    %c0_i32 = arith.constant 0 : i32
    %c0_i32_0 = arith.constant 0 : i32
    return %arg0, %arg1, %arg3, %c0_i32 : i32, i32, i32, i32
  }
  func.func @transform_3(%arg0: i32, %arg1: i32, %arg2: i32, %arg3: i32) -> (i32, i32, i32) {
    %c0_i32 = arith.constant 0 : i32
    %c0_i32_0 = arith.constant 0 : i32
    return %arg0, %c0_i32, %arg3 : i32, i32, i32
  }
  func.func @transform_4(%arg0: i32, %arg1: i32, %arg2: i32, %arg3: i32) -> (i32, i32, i32, i32) {
    %c0_i32 = arith.constant 0 : i32
    %c0_i32_0 = arith.constant 0 : i32
    return %arg0, %arg1, %arg2, %c0_i32 : i32, i32, i32, i32
  }
}

module attributes {stable_mosaic.version = 11 : i64} {
  func.func @_matmul_res_ln_kernel(%arg0: i32, %arg1: i32, %arg2: memref<16x32xbf16, #tpu.memory_space<vmem>>, %arg3: memref<32x32xbf16, #tpu.memory_space<vmem>>, %arg4: memref<1x32xf32, #tpu.memory_space<vmem>>, %arg5: memref<16x32xbf16, #tpu.memory_space<vmem>>, %arg6: memref<1x32xf32, #tpu.memory_space<vmem>>, %arg7: memref<1x32xf32, #tpu.memory_space<vmem>>, %arg8: memref<16x32xbf16, #tpu.memory_space<vmem>>, %arg9: memref<16x32xf32, #tpu.memory_space<vmem>>) attributes {dimension_semantics = [#tpu.dimension_semantics<parallel>, #tpu.dimension_semantics<arbitrary>], iteration_bounds = array<i64: 1, 1>, scalar_prefetch = 0 : i64, scratch_operands = 1 : i64, tpu.core_type = #tpu.core_type<tc>, window_params = [{transform_indices = @transform_0, window_bounds = array<i64: 16, 32>}, {transform_indices = @transform_1, window_bounds = array<i64: 32, 32>}, {pipeline_mode = #tpu.pipeline_mode<synchronous>, transform_indices = @transform_2, window_bounds = array<i64: 1, 32>}, {transform_indices = @transform_3, window_bounds = array<i64: 16, 32>}, {pipeline_mode = #tpu.pipeline_mode<synchronous>, transform_indices = @transform_4, window_bounds = array<i64: 1, 32>}, {pipeline_mode = #tpu.pipeline_mode<synchronous>, transform_indices = @transform_5, window_bounds = array<i64: 1, 32>}, {transform_indices = @transform_6, window_bounds = array<i64: 16, 32>}]} {
    %c0_i32 = arith.constant 0 : i32
    %0 = arith.cmpi eq, %arg1, %c0_i32 : i32
    %1 = arith.extui %0 : i1 to i32
    %c0_i32_0 = arith.constant 0 : i32
    %2 = arith.cmpi ne, %1, %c0_i32_0 : i32
    scf.if %2 {
      %cst_10 = arith.constant 0.000000e+00 : f32
      %12 = vector.broadcast %cst_10 : f32 to vector<16x32xf32>
      %c0_11 = arith.constant 0 : index
      %c0_12 = arith.constant 0 : index
      %13 = vector.load %arg9[%c0_11, %c0_12] : memref<16x32xf32, #tpu.memory_space<vmem>>, vector<16x32xf32>
      tpu.vector_store %arg9[%c0_11, %c0_12], %12 {strides = array<i32>} : memref<16x32xf32, #tpu.memory_space<vmem>>, vector<16x32xf32>,
    } else {
    }
    %c0 = arith.constant 0 : index
    %c0_1 = arith.constant 0 : index
    %3 = vector.load %arg9[%c0, %c0_1] : memref<16x32xf32, #tpu.memory_space<vmem>>, vector<16x32xf32>
    %c0_2 = arith.constant 0 : index
    %c0_3 = arith.constant 0 : index
    %4 = vector.load %arg2[%c0_2, %c0_3] : memref<16x32xbf16, #tpu.memory_space<vmem>>, vector<16x32xbf16>
    %c0_4 = arith.constant 0 : index
    %c0_5 = arith.constant 0 : index
    %5 = vector.load %arg3[%c0_4, %c0_5] : memref<32x32xbf16, #tpu.memory_space<vmem>>, vector<32x32xbf16>
    %cst = arith.constant dense<0.000000e+00> : vector<16x32xf32>
    %6 = tpu.matmul %4, %5, %cst {dimension_numbers = #tpu.dot_dimension_numbers<[1], [0], [0], [1], [0, 0, 1, 1], [], []>} : vector<16x32xbf16>, vector<32x32xbf16>, vector<16x32xf32> -> vector<16x32xf32>
    %7 = arith.addf %3, %6 : vector<16x32xf32>
    %c0_6 = arith.constant 0 : index
    %c0_7 = arith.constant 0 : index
    %8 = vector.load %arg9[%c0_6, %c0_7] : memref<16x32xf32, #tpu.memory_space<vmem>>, vector<16x32xf32>
    tpu.vector_store %arg9[%c0_6, %c0_7], %7 {strides = array<i32>} : memref<16x32xf32, #tpu.memory_space<vmem>>, vector<16x32xf32>,
    %c0_i32_8 = arith.constant 0 : i32
    %9 = arith.cmpi eq, %arg1, %c0_i32_8 : i32
    %10 = arith.extui %9 : i1 to i32
    %c0_i32_9 = arith.constant 0 : i32
    %11 = arith.cmpi ne, %10, %c0_i32_9 : i32
    scf.if %11 {
      %c0_10 = arith.constant 0 : index
      %c0_11 = arith.constant 0 : index
      %12 = vector.load %arg9[%c0_10, %c0_11] : memref<16x32xf32, #tpu.memory_space<vmem>>, vector<16x32xf32>
      %c0_12 = arith.constant 0 : index
      %c0_13 = arith.constant 0 : index
      %13 = vector.load %arg4[%c0_12, %c0_13] : memref<1x32xf32, #tpu.memory_space<vmem>>, vector<1x32xf32>
      %14 = vector.broadcast %13 : vector<1x32xf32> to vector<16x32xf32>
      %15 = arith.addf %12, %14 : vector<16x32xf32>
      %c0_14 = arith.constant 0 : index
      %c0_15 = arith.constant 0 : index
      %16 = vector.load %arg5[%c0_14, %c0_15] : memref<16x32xbf16, #tpu.memory_space<vmem>>, vector<16x32xbf16>
      %17 = arith.extf %16 : vector<16x32xbf16> to vector<16x32xf32>
      %18 = arith.addf %15, %17 : vector<16x32xf32>
      %cst_16 = arith.constant dense<0.000000e+00> : vector<16xf32>
      %19 = vector.multi_reduction <add>, %18, %cst_16 [1] : vector<16x32xf32> to vector<16xf32>
      %20 = vector.shape_cast %19 : vector<16xf32> to vector<16x1xf32>
      %cst_17 = arith.constant 3.200000e+01 : f32
      %21 = vector.broadcast %cst_17 : f32 to vector<16x1xf32>
      %22 = arith.divf %20, %21 : vector<16x1xf32>
      %23 = vector.broadcast %22 : vector<16x1xf32> to vector<16x32xf32>
      %24 = arith.subf %18, %23 : vector<16x32xf32>
      %25 = arith.mulf %24, %24 : vector<16x32xf32>
      %cst_18 = arith.constant dense<0.000000e+00> : vector<16xf32>
      %26 = vector.multi_reduction <add>, %25, %cst_18 [1] : vector<16x32xf32> to vector<16xf32>
      %27 = vector.shape_cast %26 : vector<16xf32> to vector<16x1xf32>
      %cst_19 = arith.constant 3.200000e+01 : f32
      %28 = vector.broadcast %cst_19 : f32 to vector<16x1xf32>
      %29 = arith.divf %27, %28 : vector<16x1xf32>
      %cst_20 = arith.constant 9.99999996E-13 : f32
      %30 = vector.broadcast %cst_20 : f32 to vector<16x1xf32>
      %31 = arith.addf %29, %30 : vector<16x1xf32>
      %32 = math.rsqrt %31 : vector<16x1xf32>
      %33 = vector.broadcast %22 : vector<16x1xf32> to vector<16x32xf32>
      %34 = arith.subf %18, %33 : vector<16x32xf32>
      %35 = vector.broadcast %32 : vector<16x1xf32> to vector<16x32xf32>
      %36 = arith.mulf %34, %35 : vector<16x32xf32>
      %c0_21 = arith.constant 0 : index
      %c0_22 = arith.constant 0 : index
      %37 = vector.load %arg6[%c0_21, %c0_22] : memref<1x32xf32, #tpu.memory_space<vmem>>, vector<1x32xf32>
      %38 = vector.broadcast %37 : vector<1x32xf32> to vector<16x32xf32>
      %39 = arith.mulf %36, %38 : vector<16x32xf32>
      %c0_23 = arith.constant 0 : index
      %c0_24 = arith.constant 0 : index
      %40 = vector.load %arg7[%c0_23, %c0_24] : memref<1x32xf32, #tpu.memory_space<vmem>>, vector<1x32xf32>
      %41 = vector.broadcast %40 : vector<1x32xf32> to vector<16x32xf32>
      %42 = arith.addf %39, %41 : vector<16x32xf32>
      %43 = arith.truncf %42 : vector<16x32xf32> to vector<16x32xbf16>
      %c0_25 = arith.constant 0 : index
      %c0_26 = arith.constant 0 : index
      %44 = vector.load %arg8[%c0_25, %c0_26] : memref<16x32xbf16, #tpu.memory_space<vmem>>, vector<16x32xbf16>
      tpu.vector_store %arg8[%c0_25, %c0_26], %43 {strides = array<i32>} : memref<16x32xbf16, #tpu.memory_space<vmem>>, vector<16x32xbf16>,
    } else {
    }
    return
  }
  func.func @transform_0(%arg0: i32, %arg1: i32) -> (i32, i32) {
    %c0_i32 = arith.constant 0 : i32
    return %arg0, %arg1 : i32, i32
  }
  func.func @transform_1(%arg0: i32, %arg1: i32) -> (i32, i32) {
    %c0_i32 = arith.constant 0 : i32
    %c0_i32_0 = arith.constant 0 : i32
    return %arg1, %c0_i32 : i32, i32
  }
  func.func @transform_2(%arg0: i32, %arg1: i32) -> (i32, i32) {
    %c0_i32 = arith.constant 0 : i32
    %c0_i32_0 = arith.constant 0 : i32
    %c0_i32_1 = arith.constant 0 : i32
    return %c0_i32, %c0_i32_0 : i32, i32
  }
  func.func @transform_3(%arg0: i32, %arg1: i32) -> (i32, i32) {
    %c0_i32 = arith.constant 0 : i32
    %c0_i32_0 = arith.constant 0 : i32
    return %arg0, %c0_i32 : i32, i32
  }
  func.func @transform_4(%arg0: i32, %arg1: i32) -> (i32, i32) {
    %c0_i32 = arith.constant 0 : i32
    %c0_i32_0 = arith.constant 0 : i32
    %c0_i32_1 = arith.constant 0 : i32
    return %c0_i32, %c0_i32_0 : i32, i32
  }
  func.func @transform_5(%arg0: i32, %arg1: i32) -> (i32, i32) {
    %c0_i32 = arith.constant 0 : i32
    %c0_i32_0 = arith.constant 0 : i32
    %c0_i32_1 = arith.constant 0 : i32
    return %c0_i32, %c0_i32_0 : i32, i32
  }
  func.func @transform_6(%arg0: i32, %arg1: i32) -> (i32, i32) {
    %c0_i32 = arith.constant 0 : i32
    %c0_i32_0 = arith.constant 0 : i32
    return %arg0, %c0_i32 : i32, i32
  }
}

module attributes {stable_mosaic.version = 11 : i64} {
  func.func @_matmul_kernel(%arg0: i32, %arg1: i32, %arg2: i32, %arg3: memref<16x32xbf16, #tpu.memory_space<vmem>>, %arg4: memref<32x64xbf16, #tpu.memory_space<vmem>>, %arg5: memref<1x64xf32, #tpu.memory_space<vmem>>, %arg6: memref<16x64xbf16, #tpu.memory_space<vmem>>, %arg7: memref<16x64xf32, #tpu.memory_space<vmem>>) attributes {dimension_semantics = [#tpu.dimension_semantics<parallel>, #tpu.dimension_semantics<parallel>, #tpu.dimension_semantics<arbitrary>], iteration_bounds = array<i64: 1, 1, 1>, scalar_prefetch = 0 : i64, scratch_operands = 1 : i64, tpu.core_type = #tpu.core_type<tc>, window_params = [{transform_indices = @transform_0, window_bounds = array<i64: 16, 32>}, {transform_indices = @transform_1, window_bounds = array<i64: 32, 64>}, {transform_indices = @transform_2, window_bounds = array<i64: 1, 64>}, {transform_indices = @transform_3, window_bounds = array<i64: 16, 64>}]} {
    %c0_i32 = arith.constant 0 : i32
    %0 = arith.cmpi eq, %arg2, %c0_i32 : i32
    %1 = arith.extui %0 : i1 to i32
    %c0_i32_0 = arith.constant 0 : i32
    %2 = arith.cmpi ne, %1, %c0_i32_0 : i32
    scf.if %2 {
      %cst_10 = arith.constant 0.000000e+00 : f32
      %12 = vector.broadcast %cst_10 : f32 to vector<16x64xf32>
      %c0_11 = arith.constant 0 : index
      %c0_12 = arith.constant 0 : index
      %13 = vector.load %arg7[%c0_11, %c0_12] : memref<16x64xf32, #tpu.memory_space<vmem>>, vector<16x64xf32>
      tpu.vector_store %arg7[%c0_11, %c0_12], %12 {strides = array<i32>} : memref<16x64xf32, #tpu.memory_space<vmem>>, vector<16x64xf32>,
    } else {
    }
    %c0 = arith.constant 0 : index
    %c0_1 = arith.constant 0 : index
    %3 = vector.load %arg7[%c0, %c0_1] : memref<16x64xf32, #tpu.memory_space<vmem>>, vector<16x64xf32>
    %c0_2 = arith.constant 0 : index
    %c0_3 = arith.constant 0 : index
    %4 = vector.load %arg3[%c0_2, %c0_3] : memref<16x32xbf16, #tpu.memory_space<vmem>>, vector<16x32xbf16>
    %c0_4 = arith.constant 0 : index
    %c0_5 = arith.constant 0 : index
    %5 = vector.load %arg4[%c0_4, %c0_5] : memref<32x64xbf16, #tpu.memory_space<vmem>>, vector<32x64xbf16>
    %cst = arith.constant dense<0.000000e+00> : vector<16x64xf32>
    %6 = tpu.matmul %4, %5, %cst {dimension_numbers = #tpu.dot_dimension_numbers<[1], [0], [0], [1], [0, 0, 1, 1], [], []>} : vector<16x32xbf16>, vector<32x64xbf16>, vector<16x64xf32> -> vector<16x64xf32>
    %7 = arith.addf %3, %6 : vector<16x64xf32>
    %c0_6 = arith.constant 0 : index
    %c0_7 = arith.constant 0 : index
    %8 = vector.load %arg7[%c0_6, %c0_7] : memref<16x64xf32, #tpu.memory_space<vmem>>, vector<16x64xf32>
    tpu.vector_store %arg7[%c0_6, %c0_7], %7 {strides = array<i32>} : memref<16x64xf32, #tpu.memory_space<vmem>>, vector<16x64xf32>,
    %c0_i32_8 = arith.constant 0 : i32
    %9 = arith.cmpi eq, %arg2, %c0_i32_8 : i32
    %10 = arith.extui %9 : i1 to i32
    %c0_i32_9 = arith.constant 0 : i32
    %11 = arith.cmpi ne, %10, %c0_i32_9 : i32
    scf.if %11 {
      %c0_10 = arith.constant 0 : index
      %c0_11 = arith.constant 0 : index
      %12 = vector.load %arg7[%c0_10, %c0_11] : memref<16x64xf32, #tpu.memory_space<vmem>>, vector<16x64xf32>
      %c0_12 = arith.constant 0 : index
      %c0_13 = arith.constant 0 : index
      %13 = vector.load %arg5[%c0_12, %c0_13] : memref<1x64xf32, #tpu.memory_space<vmem>>, vector<1x64xf32>
      %14 = vector.broadcast %13 : vector<1x64xf32> to vector<16x64xf32>
      %15 = arith.addf %12, %14 : vector<16x64xf32>
      %16 = arith.mulf %15, %15 : vector<16x64xf32>
      %17 = arith.mulf %15, %16 : vector<16x64xf32>
      %cst_14 = arith.constant 4.471500e-02 : f32
      %18 = vector.broadcast %cst_14 : f32 to vector<16x64xf32>
      %19 = arith.mulf %18, %17 : vector<16x64xf32>
      %20 = arith.addf %15, %19 : vector<16x64xf32>
      %cst_15 = arith.constant 0.797884583 : f32
      %21 = vector.broadcast %cst_15 : f32 to vector<16x64xf32>
      %22 = arith.mulf %21, %20 : vector<16x64xf32>
      %23 = math.tanh %22 : vector<16x64xf32>
      %cst_16 = arith.constant 1.000000e+00 : f32
      %24 = vector.broadcast %cst_16 : f32 to vector<16x64xf32>
      %25 = arith.addf %24, %23 : vector<16x64xf32>
      %cst_17 = arith.constant 5.000000e-01 : f32
      %26 = vector.broadcast %cst_17 : f32 to vector<16x64xf32>
      %27 = arith.mulf %26, %25 : vector<16x64xf32>
      %28 = arith.mulf %15, %27 : vector<16x64xf32>
      %29 = arith.truncf %28 : vector<16x64xf32> to vector<16x64xbf16>
      %c0_18 = arith.constant 0 : index
      %c0_19 = arith.constant 0 : index
      %30 = vector.load %arg6[%c0_18, %c0_19] : memref<16x64xbf16, #tpu.memory_space<vmem>>, vector<16x64xbf16>
      tpu.vector_store %arg6[%c0_18, %c0_19], %29 {strides = array<i32>} : memref<16x64xbf16, #tpu.memory_space<vmem>>, vector<16x64xbf16>,
    } else {
    }
    return
  }
  func.func @transform_0(%arg0: i32, %arg1: i32, %arg2: i32) -> (i32, i32) {
    %c0_i32 = arith.constant 0 : i32
    return %arg0, %arg2 : i32, i32
  }
  func.func @transform_1(%arg0: i32, %arg1: i32, %arg2: i32) -> (i32, i32) {
    %c0_i32 = arith.constant 0 : i32
    return %arg2, %arg1 : i32, i32
  }
  func.func @transform_2(%arg0: i32, %arg1: i32, %arg2: i32) -> (i32, i32) {
    %c0_i32 = arith.constant 0 : i32
    %c0_i32_0 = arith.constant 0 : i32
    return %c0_i32, %arg1 : i32, i32
  }
  func.func @transform_3(%arg0: i32, %arg1: i32, %arg2: i32) -> (i32, i32) {
    %c0_i32 = arith.constant 0 : i32
    return %arg0, %arg1 : i32, i32
  }
}

module attributes {stable_mosaic.version = 11 : i64} {
  func.func @_matmul_res_ln_kernel(%arg0: i32, %arg1: i32, %arg2: memref<16x64xbf16, #tpu.memory_space<vmem>>, %arg3: memref<64x32xbf16, #tpu.memory_space<vmem>>, %arg4: memref<1x32xf32, #tpu.memory_space<vmem>>, %arg5: memref<16x32xbf16, #tpu.memory_space<vmem>>, %arg6: memref<1x32xf32, #tpu.memory_space<vmem>>, %arg7: memref<1x32xf32, #tpu.memory_space<vmem>>, %arg8: memref<16x32xbf16, #tpu.memory_space<vmem>>, %arg9: memref<16x32xf32, #tpu.memory_space<vmem>>) attributes {dimension_semantics = [#tpu.dimension_semantics<parallel>, #tpu.dimension_semantics<arbitrary>], iteration_bounds = array<i64: 1, 1>, scalar_prefetch = 0 : i64, scratch_operands = 1 : i64, tpu.core_type = #tpu.core_type<tc>, window_params = [{transform_indices = @transform_0, window_bounds = array<i64: 16, 64>}, {transform_indices = @transform_1, window_bounds = array<i64: 64, 32>}, {pipeline_mode = #tpu.pipeline_mode<synchronous>, transform_indices = @transform_2, window_bounds = array<i64: 1, 32>}, {transform_indices = @transform_3, window_bounds = array<i64: 16, 32>}, {pipeline_mode = #tpu.pipeline_mode<synchronous>, transform_indices = @transform_4, window_bounds = array<i64: 1, 32>}, {pipeline_mode = #tpu.pipeline_mode<synchronous>, transform_indices = @transform_5, window_bounds = array<i64: 1, 32>}, {transform_indices = @transform_6, window_bounds = array<i64: 16, 32>}]} {
    %c0_i32 = arith.constant 0 : i32
    %0 = arith.cmpi eq, %arg1, %c0_i32 : i32
    %1 = arith.extui %0 : i1 to i32
    %c0_i32_0 = arith.constant 0 : i32
    %2 = arith.cmpi ne, %1, %c0_i32_0 : i32
    scf.if %2 {
      %cst_10 = arith.constant 0.000000e+00 : f32
      %12 = vector.broadcast %cst_10 : f32 to vector<16x32xf32>
      %c0_11 = arith.constant 0 : index
      %c0_12 = arith.constant 0 : index
      %13 = vector.load %arg9[%c0_11, %c0_12] : memref<16x32xf32, #tpu.memory_space<vmem>>, vector<16x32xf32>
      tpu.vector_store %arg9[%c0_11, %c0_12], %12 {strides = array<i32>} : memref<16x32xf32, #tpu.memory_space<vmem>>, vector<16x32xf32>,
    } else {
    }
    %c0 = arith.constant 0 : index
    %c0_1 = arith.constant 0 : index
    %3 = vector.load %arg9[%c0, %c0_1] : memref<16x32xf32, #tpu.memory_space<vmem>>, vector<16x32xf32>
    %c0_2 = arith.constant 0 : index
    %c0_3 = arith.constant 0 : index
    %4 = vector.load %arg2[%c0_2, %c0_3] : memref<16x64xbf16, #tpu.memory_space<vmem>>, vector<16x64xbf16>
    %c0_4 = arith.constant 0 : index
    %c0_5 = arith.constant 0 : index
    %5 = vector.load %arg3[%c0_4, %c0_5] : memref<64x32xbf16, #tpu.memory_space<vmem>>, vector<64x32xbf16>
    %cst = arith.constant dense<0.000000e+00> : vector<16x32xf32>
    %6 = tpu.matmul %4, %5, %cst {dimension_numbers = #tpu.dot_dimension_numbers<[1], [0], [0], [1], [0, 0, 1, 1], [], []>} : vector<16x64xbf16>, vector<64x32xbf16>, vector<16x32xf32> -> vector<16x32xf32>
    %7 = arith.addf %3, %6 : vector<16x32xf32>
    %c0_6 = arith.constant 0 : index
    %c0_7 = arith.constant 0 : index
    %8 = vector.load %arg9[%c0_6, %c0_7] : memref<16x32xf32, #tpu.memory_space<vmem>>, vector<16x32xf32>
    tpu.vector_store %arg9[%c0_6, %c0_7], %7 {strides = array<i32>} : memref<16x32xf32, #tpu.memory_space<vmem>>, vector<16x32xf32>,
    %c0_i32_8 = arith.constant 0 : i32
    %9 = arith.cmpi eq, %arg1, %c0_i32_8 : i32
    %10 = arith.extui %9 : i1 to i32
    %c0_i32_9 = arith.constant 0 : i32
    %11 = arith.cmpi ne, %10, %c0_i32_9 : i32
    scf.if %11 {
      %c0_10 = arith.constant 0 : index
      %c0_11 = arith.constant 0 : index
      %12 = vector.load %arg9[%c0_10, %c0_11] : memref<16x32xf32, #tpu.memory_space<vmem>>, vector<16x32xf32>
      %c0_12 = arith.constant 0 : index
      %c0_13 = arith.constant 0 : index
      %13 = vector.load %arg4[%c0_12, %c0_13] : memref<1x32xf32, #tpu.memory_space<vmem>>, vector<1x32xf32>
      %14 = vector.broadcast %13 : vector<1x32xf32> to vector<16x32xf32>
      %15 = arith.addf %12, %14 : vector<16x32xf32>
      %c0_14 = arith.constant 0 : index
      %c0_15 = arith.constant 0 : index
      %16 = vector.load %arg5[%c0_14, %c0_15] : memref<16x32xbf16, #tpu.memory_space<vmem>>, vector<16x32xbf16>
      %17 = arith.extf %16 : vector<16x32xbf16> to vector<16x32xf32>
      %18 = arith.addf %15, %17 : vector<16x32xf32>
      %cst_16 = arith.constant dense<0.000000e+00> : vector<16xf32>
      %19 = vector.multi_reduction <add>, %18, %cst_16 [1] : vector<16x32xf32> to vector<16xf32>
      %20 = vector.shape_cast %19 : vector<16xf32> to vector<16x1xf32>
      %cst_17 = arith.constant 3.200000e+01 : f32
      %21 = vector.broadcast %cst_17 : f32 to vector<16x1xf32>
      %22 = arith.divf %20, %21 : vector<16x1xf32>
      %23 = vector.broadcast %22 : vector<16x1xf32> to vector<16x32xf32>
      %24 = arith.subf %18, %23 : vector<16x32xf32>
      %25 = arith.mulf %24, %24 : vector<16x32xf32>
      %cst_18 = arith.constant dense<0.000000e+00> : vector<16xf32>
      %26 = vector.multi_reduction <add>, %25, %cst_18 [1] : vector<16x32xf32> to vector<16xf32>
      %27 = vector.shape_cast %26 : vector<16xf32> to vector<16x1xf32>
      %cst_19 = arith.constant 3.200000e+01 : f32
      %28 = vector.broadcast %cst_19 : f32 to vector<16x1xf32>
      %29 = arith.divf %27, %28 : vector<16x1xf32>
      %cst_20 = arith.constant 9.99999996E-13 : f32
      %30 = vector.broadcast %cst_20 : f32 to vector<16x1xf32>
      %31 = arith.addf %29, %30 : vector<16x1xf32>
      %32 = math.rsqrt %31 : vector<16x1xf32>
      %33 = vector.broadcast %22 : vector<16x1xf32> to vector<16x32xf32>
      %34 = arith.subf %18, %33 : vector<16x32xf32>
      %35 = vector.broadcast %32 : vector<16x1xf32> to vector<16x32xf32>
      %36 = arith.mulf %34, %35 : vector<16x32xf32>
      %c0_21 = arith.constant 0 : index
      %c0_22 = arith.constant 0 : index
      %37 = vector.load %arg6[%c0_21, %c0_22] : memref<1x32xf32, #tpu.memory_space<vmem>>, vector<1x32xf32>
      %38 = vector.broadcast %37 : vector<1x32xf32> to vector<16x32xf32>
      %39 = arith.mulf %36, %38 : vector<16x32xf32>
      %c0_23 = arith.constant 0 : index
      %c0_24 = arith.constant 0 : index
      %40 = vector.load %arg7[%c0_23, %c0_24] : memref<1x32xf32, #tpu.memory_space<vmem>>, vector<1x32xf32>
      %41 = vector.broadcast %40 : vector<1x32xf32> to vector<16x32xf32>
      %42 = arith.addf %39, %41 : vector<16x32xf32>
      %43 = arith.truncf %42 : vector<16x32xf32> to vector<16x32xbf16>
      %c0_25 = arith.constant 0 : index
      %c0_26 = arith.constant 0 : index
      %44 = vector.load %arg8[%c0_25, %c0_26] : memref<16x32xbf16, #tpu.memory_space<vmem>>, vector<16x32xbf16>
      tpu.vector_store %arg8[%c0_25, %c0_26], %43 {strides = array<i32>} : memref<16x32xbf16, #tpu.memory_space<vmem>>, vector<16x32xbf16>,
    } else {
    }
    return
  }
  func.func @transform_0(%arg0: i32, %arg1: i32) -> (i32, i32) {
    %c0_i32 = arith.constant 0 : i32
    return %arg0, %arg1 : i32, i32
  }
  func.func @transform_1(%arg0: i32, %arg1: i32) -> (i32, i32) {
    %c0_i32 = arith.constant 0 : i32
    %c0_i32_0 = arith.constant 0 : i32
    return %arg1, %c0_i32 : i32, i32
  }
  func.func @transform_2(%arg0: i32, %arg1: i32) -> (i32, i32) {
    %c0_i32 = arith.constant 0 : i32
    %c0_i32_0 = arith.constant 0 : i32
    %c0_i32_1 = arith.constant 0 : i32
    return %c0_i32, %c0_i32_0 : i32, i32
  }
  func.func @transform_3(%arg0: i32, %arg1: i32) -> (i32, i32) {
    %c0_i32 = arith.constant 0 : i32
    %c0_i32_0 = arith.constant 0 : i32
    return %arg0, %c0_i32 : i32, i32
  }
  func.func @transform_4(%arg0: i32, %arg1: i32) -> (i32, i32) {
    %c0_i32 = arith.constant 0 : i32
    %c0_i32_0 = arith.constant 0 : i32
    %c0_i32_1 = arith.constant 0 : i32
    return %c0_i32, %c0_i32_0 : i32, i32
  }
  func.func @transform_5(%arg0: i32, %arg1: i32) -> (i32, i32) {
    %c0_i32 = arith.constant 0 : i32
    %c0_i32_0 = arith.constant 0 : i32
    %c0_i32_1 = arith.constant 0 : i32
    return %c0_i32, %c0_i32_0 : i32, i32
  }
  func.func @transform_6(%arg0: i32, %arg1: i32) -> (i32, i32) {
    %c0_i32 = arith.constant 0 : i32
    %c0_i32_0 = arith.constant 0 : i32
    return %arg0, %c0_i32 : i32, i32
  }
}

module attributes {stable_mosaic.version = 11 : i64} {
  func.func @_matmul_kernel(%arg0: i32, %arg1: i32, %arg2: i32, %arg3: memref<2x32xbf16, #tpu.memory_space<vmem>>, %arg4: memref<32x32xbf16, #tpu.memory_space<vmem>>, %arg5: memref<1x32xf32, #tpu.memory_space<vmem>>, %arg6: memref<2x32xbf16, #tpu.memory_space<vmem>>, %arg7: memref<2x32xf32, #tpu.memory_space<vmem>>) attributes {dimension_semantics = [#tpu.dimension_semantics<parallel>, #tpu.dimension_semantics<parallel>, #tpu.dimension_semantics<arbitrary>], iteration_bounds = array<i64: 1, 1, 1>, scalar_prefetch = 0 : i64, scratch_operands = 1 : i64, tpu.core_type = #tpu.core_type<tc>, window_params = [{transform_indices = @transform_0, window_bounds = array<i64: 2, 32>}, {transform_indices = @transform_1, window_bounds = array<i64: 32, 32>}, {transform_indices = @transform_2, window_bounds = array<i64: 1, 32>}, {transform_indices = @transform_3, window_bounds = array<i64: 2, 32>}]} {
    %c0_i32 = arith.constant 0 : i32
    %0 = arith.cmpi eq, %arg2, %c0_i32 : i32
    %1 = arith.extui %0 : i1 to i32
    %c0_i32_0 = arith.constant 0 : i32
    %2 = arith.cmpi ne, %1, %c0_i32_0 : i32
    scf.if %2 {
      %cst_10 = arith.constant 0.000000e+00 : f32
      %12 = vector.broadcast %cst_10 : f32 to vector<2x32xf32>
      %c0_11 = arith.constant 0 : index
      %c0_12 = arith.constant 0 : index
      %13 = vector.load %arg7[%c0_11, %c0_12] : memref<2x32xf32, #tpu.memory_space<vmem>>, vector<2x32xf32>
      tpu.vector_store %arg7[%c0_11, %c0_12], %12 {strides = array<i32>} : memref<2x32xf32, #tpu.memory_space<vmem>>, vector<2x32xf32>,
    } else {
    }
    %c0 = arith.constant 0 : index
    %c0_1 = arith.constant 0 : index
    %3 = vector.load %arg7[%c0, %c0_1] : memref<2x32xf32, #tpu.memory_space<vmem>>, vector<2x32xf32>
    %c0_2 = arith.constant 0 : index
    %c0_3 = arith.constant 0 : index
    %4 = vector.load %arg3[%c0_2, %c0_3] : memref<2x32xbf16, #tpu.memory_space<vmem>>, vector<2x32xbf16>
    %c0_4 = arith.constant 0 : index
    %c0_5 = arith.constant 0 : index
    %5 = vector.load %arg4[%c0_4, %c0_5] : memref<32x32xbf16, #tpu.memory_space<vmem>>, vector<32x32xbf16>
    %cst = arith.constant dense<0.000000e+00> : vector<2x32xf32>
    %6 = tpu.matmul %4, %5, %cst {dimension_numbers = #tpu.dot_dimension_numbers<[1], [0], [0], [1], [0, 0, 1, 1], [], []>} : vector<2x32xbf16>, vector<32x32xbf16>, vector<2x32xf32> -> vector<2x32xf32>
    %7 = arith.addf %3, %6 : vector<2x32xf32>
    %c0_6 = arith.constant 0 : index
    %c0_7 = arith.constant 0 : index
    %8 = vector.load %arg7[%c0_6, %c0_7] : memref<2x32xf32, #tpu.memory_space<vmem>>, vector<2x32xf32>
    tpu.vector_store %arg7[%c0_6, %c0_7], %7 {strides = array<i32>} : memref<2x32xf32, #tpu.memory_space<vmem>>, vector<2x32xf32>,
    %c0_i32_8 = arith.constant 0 : i32
    %9 = arith.cmpi eq, %arg2, %c0_i32_8 : i32
    %10 = arith.extui %9 : i1 to i32
    %c0_i32_9 = arith.constant 0 : i32
    %11 = arith.cmpi ne, %10, %c0_i32_9 : i32
    scf.if %11 {
      %c0_10 = arith.constant 0 : index
      %c0_11 = arith.constant 0 : index
      %12 = vector.load %arg7[%c0_10, %c0_11] : memref<2x32xf32, #tpu.memory_space<vmem>>, vector<2x32xf32>
      %c0_12 = arith.constant 0 : index
      %c0_13 = arith.constant 0 : index
      %13 = vector.load %arg5[%c0_12, %c0_13] : memref<1x32xf32, #tpu.memory_space<vmem>>, vector<1x32xf32>
      %14 = vector.broadcast %13 : vector<1x32xf32> to vector<2x32xf32>
      %15 = arith.addf %12, %14 : vector<2x32xf32>
      %16 = math.tanh %15 : vector<2x32xf32>
      %17 = arith.truncf %16 : vector<2x32xf32> to vector<2x32xbf16>
      %c0_14 = arith.constant 0 : index
      %c0_15 = arith.constant 0 : index
      %18 = vector.load %arg6[%c0_14, %c0_15] : memref<2x32xbf16, #tpu.memory_space<vmem>>, vector<2x32xbf16>
      tpu.vector_store %arg6[%c0_14, %c0_15], %17 {strides = array<i32>} : memref<2x32xbf16, #tpu.memory_space<vmem>>, vector<2x32xbf16>,
    } else {
    }
    return
  }
  func.func @transform_0(%arg0: i32, %arg1: i32, %arg2: i32) -> (i32, i32) {
    %c0_i32 = arith.constant 0 : i32
    return %arg0, %arg2 : i32, i32
  }
  func.func @transform_1(%arg0: i32, %arg1: i32, %arg2: i32) -> (i32, i32) {
    %c0_i32 = arith.constant 0 : i32
    return %arg2, %arg1 : i32, i32
  }
  func.func @transform_2(%arg0: i32, %arg1: i32, %arg2: i32) -> (i32, i32) {
    %c0_i32 = arith.constant 0 : i32
    %c0_i32_0 = arith.constant 0 : i32
    return %c0_i32, %arg1 : i32, i32
  }
  func.func @transform_3(%arg0: i32, %arg1: i32, %arg2: i32) -> (i32, i32) {
    %c0_i32 = arith.constant 0 : i32
    return %arg0, %arg1 : i32, i32
  }
}

module attributes {stable_mosaic.version = 11 : i64} {
  func.func @_matmul_kernel(%arg0: i32, %arg1: i32, %arg2: i32, %arg3: memref<2x32xbf16, #tpu.memory_space<vmem>>, %arg4: memref<32x1xbf16, #tpu.memory_space<vmem>>, %arg5: memref<1x1xf32, #tpu.memory_space<vmem>>, %arg6: memref<2x1xf32, #tpu.memory_space<vmem>>, %arg7: memref<2x1xf32, #tpu.memory_space<vmem>>) attributes {dimension_semantics = [#tpu.dimension_semantics<parallel>, #tpu.dimension_semantics<parallel>, #tpu.dimension_semantics<arbitrary>], iteration_bounds = array<i64: 1, 1, 1>, scalar_prefetch = 0 : i64, scratch_operands = 1 : i64, tpu.core_type = #tpu.core_type<tc>, window_params = [{transform_indices = @transform_0, window_bounds = array<i64: 2, 32>}, {transform_indices = @transform_1, window_bounds = array<i64: 32, 1>}, {transform_indices = @transform_2, window_bounds = array<i64: 1, 1>}, {transform_indices = @transform_3, window_bounds = array<i64: 2, 1>}]} {
    %c0_i32 = arith.constant 0 : i32
    %0 = arith.cmpi eq, %arg2, %c0_i32 : i32
    %1 = arith.extui %0 : i1 to i32
    %c0_i32_0 = arith.constant 0 : i32
    %2 = arith.cmpi ne, %1, %c0_i32_0 : i32
    scf.if %2 {
      %cst_10 = arith.constant 0.000000e+00 : f32
      %12 = vector.broadcast %cst_10 : f32 to vector<2x1xf32>
      %c0_11 = arith.constant 0 : index
      %c0_12 = arith.constant 0 : index
      %13 = vector.load %arg7[%c0_11, %c0_12] : memref<2x1xf32, #tpu.memory_space<vmem>>, vector<2x1xf32>
      tpu.vector_store %arg7[%c0_11, %c0_12], %12 {strides = array<i32>} : memref<2x1xf32, #tpu.memory_space<vmem>>, vector<2x1xf32>,
    } else {
    }
    %c0 = arith.constant 0 : index
    %c0_1 = arith.constant 0 : index
    %3 = vector.load %arg7[%c0, %c0_1] : memref<2x1xf32, #tpu.memory_space<vmem>>, vector<2x1xf32>
    %c0_2 = arith.constant 0 : index
    %c0_3 = arith.constant 0 : index
    %4 = vector.load %arg3[%c0_2, %c0_3] : memref<2x32xbf16, #tpu.memory_space<vmem>>, vector<2x32xbf16>
    %c0_4 = arith.constant 0 : index
    %c0_5 = arith.constant 0 : index
    %5 = vector.load %arg4[%c0_4, %c0_5] : memref<32x1xbf16, #tpu.memory_space<vmem>>, vector<32x1xbf16>
    %cst = arith.constant dense<0.000000e+00> : vector<2x1xf32>
    %6 = tpu.matmul %4, %5, %cst {dimension_numbers = #tpu.dot_dimension_numbers<[1], [0], [0], [1], [0, 0, 1, 1], [], []>} : vector<2x32xbf16>, vector<32x1xbf16>, vector<2x1xf32> -> vector<2x1xf32>
    %7 = arith.addf %3, %6 : vector<2x1xf32>
    %c0_6 = arith.constant 0 : index
    %c0_7 = arith.constant 0 : index
    %8 = vector.load %arg7[%c0_6, %c0_7] : memref<2x1xf32, #tpu.memory_space<vmem>>, vector<2x1xf32>
    tpu.vector_store %arg7[%c0_6, %c0_7], %7 {strides = array<i32>} : memref<2x1xf32, #tpu.memory_space<vmem>>, vector<2x1xf32>,
    %c0_i32_8 = arith.constant 0 : i32
    %9 = arith.cmpi eq, %arg2, %c0_i32_8 : i32
    %10 = arith.extui %9 : i1 to i32
    %c0_i32_9 = arith.constant 0 : i32
    %11 = arith.cmpi ne, %10, %c0_i32_9 : i32
    scf.if %11 {
      %c0_10 = arith.constant 0 : index
      %c0_11 = arith.constant 0 : index
      %12 = vector.load %arg7[%c0_10, %c0_11] : memref<2x1xf32, #tpu.memory_space<vmem>>, vector<2x1xf32>
      %c0_12 = arith.constant 0 : index
      %c0_13 = arith.constant 0 : index
      %13 = vector.load %arg5[%c0_12, %c0_13] : memref<1x1xf32, #tpu.memory_space<vmem>>, vector<1x1xf32>
      %14 = vector.broadcast %13 : vector<1x1xf32> to vector<2x1xf32>
      %15 = arith.addf %12, %14 : vector<2x1xf32>
      %c0_14 = arith.constant 0 : index
      %c0_15 = arith.constant 0 : index
      %16 = vector.load %arg6[%c0_14, %c0_15] : memref<2x1xf32, #tpu.memory_space<vmem>>, vector<2x1xf32>
      tpu.vector_store %arg6[%c0_14, %c0_15], %15 {strides = array<i32>} : memref<2x1xf32, #tpu.memory_space<vmem>>, vector<2x1xf32>,
    } else {
    }
    return
  }
  func.func @transform_0(%arg0: i32, %arg1: i32, %arg2: i32) -> (i32, i32) {
    %c0_i32 = arith.constant 0 : i32
    return %arg0, %arg2 : i32, i32
  }
  func.func @transform_1(%arg0: i32, %arg1: i32, %arg2: i32) -> (i32, i32) {
    %c0_i32 = arith.constant 0 : i32
    return %arg2, %arg1 : i32, i32
  }
  func.func @transform_2(%arg0: i32, %arg1: i32, %arg2: i32) -> (i32, i32) {
    %c0_i32 = arith.constant 0 : i32
    %c0_i32_0 = arith.constant 0 : i32
    return %c0_i32, %arg1 : i32, i32
  }
  func.func @transform_3(%arg0: i32, %arg1: i32, %arg2: i32) -> (i32, i32) {
    %c0_i32 = arith.constant 0 : i32
    return %arg0, %arg1 : i32, i32
  }
}

module attributes {stable_mosaic.version = 11 : i64} {
  func.func @_mse_kernel(%arg0: i32, %arg1: memref<2x1xf32, #tpu.memory_space<vmem>>, %arg2: memref<2x1xf32, #tpu.memory_space<vmem>>, %arg3: memref<1x1xf32, #tpu.memory_space<vmem>>) attributes {dimension_semantics = [#tpu.dimension_semantics<arbitrary>], iteration_bounds = array<i64: 1>, scalar_prefetch = 0 : i64, scratch_operands = 0 : i64, tpu.core_type = #tpu.core_type<tc>, window_params = [{pipeline_mode = #tpu.pipeline_mode<synchronous>, transform_indices = @transform_0, window_bounds = array<i64: 2, 1>}, {pipeline_mode = #tpu.pipeline_mode<synchronous>, transform_indices = @transform_1, window_bounds = array<i64: 2, 1>}, {pipeline_mode = #tpu.pipeline_mode<synchronous>, transform_indices = @transform_2, window_bounds = array<i64: 1, 1>}]} {
    %c0 = arith.constant 0 : index
    %c0_0 = arith.constant 0 : index
    %0 = vector.load %arg1[%c0, %c0_0] : memref<2x1xf32, #tpu.memory_space<vmem>>, vector<2x1xf32>
    %c0_1 = arith.constant 0 : index
    %c0_2 = arith.constant 0 : index
    %1 = vector.load %arg2[%c0_1, %c0_2] : memref<2x1xf32, #tpu.memory_space<vmem>>, vector<2x1xf32>
    %2 = arith.subf %0, %1 : vector<2x1xf32>
    %3 = arith.mulf %2, %2 : vector<2x1xf32>
    %4 = vector.shape_cast %3 : vector<2x1xf32> to vector<1x2x1xf32>
    %cst = arith.constant dense<0.000000e+00> : vector<1xf32>
    %5 = vector.multi_reduction <add>, %4, %cst [1, 2] : vector<1x2x1xf32> to vector<1xf32>
    %6 = vector.shape_cast %5 : vector<1xf32> to vector<1x1x1xf32>
    %7 = vector.extract %6[0, 0, 0] : f32 from vector<1x1x1xf32>
    %8 = vector.broadcast %7 : f32 to vector<1x1xf32>
    %cst_3 = arith.constant 2.000000e+00 : f32
    %9 = vector.broadcast %cst_3 : f32 to vector<1x1xf32>
    %10 = arith.divf %8, %9 : vector<1x1xf32>
    %c0_4 = arith.constant 0 : index
    %c0_5 = arith.constant 0 : index
    %11 = vector.load %arg3[%c0_4, %c0_5] : memref<1x1xf32, #tpu.memory_space<vmem>>, vector<1x1xf32>
    tpu.vector_store %arg3[%c0_4, %c0_5], %10 {strides = array<i32>} : memref<1x1xf32, #tpu.memory_space<vmem>>, vector<1x1xf32>,
    return
  }
  func.func @transform_0(%arg0: i32) -> (i32, i32) {
    %c0_i32 = arith.constant 0 : i32
    %c0_i32_0 = arith.constant 0 : i32
    %c0_i32_1 = arith.constant 0 : i32
    return %c0_i32, %c0_i32_0 : i32, i32
  }
  func.func @transform_1(%arg0: i32) -> (i32, i32) {
    %c0_i32 = arith.constant 0 : i32
    %c0_i32_0 = arith.constant 0 : i32
    %c0_i32_1 = arith.constant 0 : i32
    return %c0_i32, %c0_i32_0 : i32, i32
  }
  func.func @transform_2(%arg0: i32) -> (i32, i32) {
    %c0_i32 = arith.constant 0 : i32
    %c0_i32_0 = arith.constant 0 : i32
    %c0_i32_1 = arith.constant 0 : i32
    return %c0_i32, %c0_i32_0 : i32, i32
  }
}

</mosaic_0001>

<bundles_post_ra>
// kernel: stsb_forward.15
= control target key start
LH: loop header
LB: loop body
LE: loop exit
PB: predicated region body
PF: predicated region fallthrough
CT: control target
= control target key end

     0   :  { %vm19_vm0 = vcmask 785408   ;;  %v151_v0 = vmov 0.0   ;;  %vm152_vm1 = vmmov 0   ;;  %vm47_vm2 = vcmask 261120   ;;  %s195_s1 = inlined_call_operand.vmem [shape: bf16[32,96], index: 1, kind: input, shape index: {}]   ;;  %s196_s0 = inlined_call_operand.vmem [shape: bf16[16,32], index: 0, kind: input, shape index: {}]   ;;  %s197_s2 = inlined_call_operand.vmem [shape: f32[1,96], index: 2, kind: input, shape index: {}]   ;;  %s198_s3 = inlined_call_operand.vmem [shape: bf16[16,96], index: 3, kind: output, shape index: {}]  }
   0x1   :  { %138 = vmatprep.subr.bf16.mxu0 %v151_v0  ;;  %v148_v1 = vld [vmem:[%s195_s1 + $0x8] sm:$0xff]   ;;  %142 = vmatprep.mubr.msk.bf16.mxu0 %vm152_vm1, %v151_v0  ;;  %20 = vst.msk [vmem:[#allocation2] sm:$0xff] %vm19_vm0, %v151_v0  ;;  %21 = vst.msk [vmem:[#allocation2 + $0x8] sm:$0xff] %vm19_vm0, %v151_v0  ;;  %v149_v2 = vld [vmem:[%s195_s1] sm:$0xff]   ;;  %vm119_vm3 = vcmask 781312  }
   0x2   :  { %139 = vmatpush3.bf16.msra.mxu0 %v148_v1  ;;  %v150_v3 = vld [vmem:[%s196_s0] sm:$0xff]  }
   0x3   :  { %140 = vmatprep.subr.bf16.mxu0 %v151_v0  ;;  %v130_v12 = vld [vmem:[%s197_s2] ss:$0 sm:$0xff] }
   0x6   :  { %141 = vmatpush3.bf16.msra.mxu0 %v149_v2 }
   0x8   :  { %v22_v4 = vld [vmem:[#allocation2] sm:$0xff]  ;;  %v23_v8 = vld [vmem:[#allocation2 + $0x8] sm:$0xff] }
   0x9   :  { %143 = vmatmul.mubr.msk.bf16.vlgmr.msra.gmra.mxu0 %vm47_vm2, %v150_v3 }
  0xc9   :  { %v85_v5 = vpop.f32.mrf.mxu0 }
  0xca   :  { %v92_v6 = vadd.f32 %v85_v5, %v22_v4 }
  0xcb   :  { %v144_v7 = vpop.f32.mrf.mxu0 }
  0xcc   :  { %95 = vst.msk [vmem:[#allocation2] sm:$0xff] %vm19_vm0, %v92_v6 }
  0xcd   :  { %v88_v9 = vpop.f32.mrf.mxu0 }
  0xce   :  { %v93_v10 = vadd.f32 %v88_v9, %v23_v8 }
  0xcf   :  { %v145_v11 = vpop.f32.mrf.mxu0 }
  0xd0   :  { %96 = vst.msk [vmem:[#allocation2 + $0x8] sm:$0xff] %vm19_vm0, %v93_v10 }
  0xd3   :  { %v100_v13 = vld [vmem:[#allocation2] sm:$0xff] }
  0xd4   :  { %v109_v14 = vadd.f32 %v130_v12, %v100_v13 }
  0xd6   :  { %v133_v15 = vpack.c.bf16 %v109_v14, %v109_v14 }
  0xd7   :  { %v101_v16 = vld [vmem:[#allocation2 + $0x8] sm:$0xff] }
  0xd8   :  { %120 = vst.msk [vmem:[%s198_s3] sm:$0xf] %vm119_vm3, %v133_v15  ;;  %v110_v17 = vadd.f32 %v130_v12, %v101_v16 }
  0xda   :  { %v134_v18 = vpack.c.bf16 %v110_v17, %v110_v17 }
  0xdc   :  { %121 = vst.msk [vmem:[%s198_s3 + $0x4] sm:$0xf] %vm119_vm3, %v134_v18 }

// kernel: stsb_forward.14
= control target key start
LH: loop header
LB: loop body
LE: loop exit
PB: predicated region body
PF: predicated region fallthrough
CT: control target
= control target key end

     0   :  { %vm16_vm0 = vcmask 261120   ;;  %vm70_vm1 = vcmask 257024   ;;  %s129_s0 = inlined_call_operand.vmem [shape: f32[16,32], index: 0, kind: input, shape index: {}]   ;;  %s130_s1 = inlined_call_operand.vmem [shape: f32[1,32], index: 1, kind: input, shape index: {}]   ;;  %s131_s2 = inlined_call_operand.vmem [shape: f32[1,32], index: 2, kind: input, shape index: {}]   ;;  %s132_s3 = inlined_call_operand.vmem [shape: bf16[16,32], index: 3, kind: output, shape index: {}]  }
   0x1   :  { %v14_v0 = vld [vmem:[%s129_s0] sm:$0xff]  ;;  %v15_v1 = vld [vmem:[%s129_s0 + $0x8] sm:$0xff] }
   0x2   :  { %v17_v2 = vsel %vm16_vm0, %v14_v0, 0.0  ;;  %v20_v3 = vsel %vm16_vm0, %v15_v1, 0.0  ;;  %v77_v21 = vld [vmem:[%s130_s1] ss:$0 sm:$0xff] }
   0x3   :  { %18 = vadd.xlane.f32.xlu0 %v17_v2  ;;  %v78_v23 = vld [vmem:[%s131_s2] ss:$0 sm:$0xff] }
   0x7   :  { %21 = vadd.xlane.f32.xlu0 %v20_v3 }
  0x8c   :  { %v19_v4 = vpop.xlane.xlu0 %18 }
  0x8d   :  { %v24_v5 = vmul.f32 0.03125, %v19_v4 }
  0x8f   :  { %v26_v6 = vsub.f32 %v14_v0, %v24_v5 }
  0x90   :  { %v22_v7 = vpop.xlane.xlu0 %21 }
  0x91   :  { %v25_v8 = vmul.f32 0.03125, %v22_v7  ;;  %v28_v9 = vmul.f32 %v26_v6, %v26_v6 }
  0x93   :  { %v27_v10 = vsub.f32 %v15_v1, %v25_v8  ;;  %v30_v11 = vsel %vm16_vm0, %v28_v9, 0.0 }
  0x94   :  { %31 = vadd.xlane.f32.xlu1 %v30_v11 }
  0x95   :  { %v29_v12 = vmul.f32 %v27_v10, %v27_v10 }
  0x97   :  { %v33_v13 = vsel %vm16_vm0, %v29_v12, 0.0 }
  0x98   :  { %34 = vadd.xlane.f32.xlu1 %v33_v13 }
 0x11d   :  { %v32_v14 = vpop.xlane.xlu1 %31 }
 0x11e   :  { %v36_v15 = vmul.f32 0.03125, %v32_v14 }
 0x120   :  { %v38_v16 = vadd.f32 1e-12, %v36_v15 }
 0x121   :  { %v35_v17 = vpop.xlane.xlu1 %34 }
 0x122   :  { %83 = vrsqrt.f32 %v38_v16  ;;  %v37_v18 = vmul.f32 0.03125, %v35_v17 }
 0x124   :  { %v39_v19 = vadd.f32 1e-12, %v37_v18 }
 0x126   :  { %85 = vrsqrt.f32 %v39_v19 }
 0x12f   :  { %v84_v20 = vpop.eup %83 }
 0x130   :  { %v42_v22 = vmul.f32 %v84_v20, %v26_v6 }
 0x132   :  { %v51_v24 = vmul.f32 %v77_v21, %v42_v22 }
 0x133   :  { %v86_v25 = vpop.eup %85 }
 0x134   :  { %v60_v26 = vadd.f32 %v78_v23, %v51_v24  ;;  %v43_v27 = vmul.f32 %v86_v25, %v27_v10 }
 0x136   :  { %v81_v28 = vpack.c.bf16 %v60_v26, %v60_v26  ;;  %v52_v29 = vmul.f32 %v77_v21, %v43_v27 }
 0x138   :  { %71 = vst.msk [vmem:[%s132_s3] sm:$0xf] %vm70_vm1, %v81_v28  ;;  %v61_v30 = vadd.f32 %v78_v23, %v52_v29 }
 0x13a   :  { %v82_v31 = vpack.c.bf16 %v61_v30, %v61_v30 }
 0x13c   :  { %72 = vst.msk [vmem:[%s132_s3 + $0x4] sm:$0xf] %vm70_vm1, %v82_v31 }

// kernel: stsb_forward.16
= control target key start
LH: loop header
LB: loop body
LE: loop exit
PB: predicated region body
PF: predicated region fallthrough
CT: control target
= control target key end

     0   :  { %s851_s15 = smov 0   ;;  %s853_s16 = smov 0   ;;  %s928_s0 = inlined_call_operand.vmem [shape: bf16[2,4,8,8], index: 0, kind: input, shape index: {}]   ;;  %s929_s1 = inlined_call_operand.vmem [shape: bf16[2,4,8,8], index: 1, kind: input, shape index: {}]   ;;  %s930_s2 = inlined_call_operand.vmem [shape: bf16[2,4,8,8], index: 2, kind: input, shape index: {}]   ;;  %s931_s3 = inlined_call_operand.vmem [shape: f32[2,1,8], index: 3, kind: input, shape index: {}]   ;;  %s932_s4 = inlined_call_operand.vmem [shape: bf16[2,4,8,8], index: 4, kind: output, shape index: {}]  }
   0x1   :  { %s855_s17 = smov 0   ;;  %s857_s18 = smov 0  }
   0x2   :  { %s859_s19 = smov 0  }
   0x3 LB: > { %s36_s20 = sadd.s32 1, %s812_s17  ;;  %s40_s21 = sadd.s32 1, %s816_s18  ;;  %s820_s19 = sphi %s859_s19, %s14_s19   ;;  %s816_s18 = sphi %s857_s18, %s936_s18   ;;  %s812_s17 = sphi %s855_s17, %s935_s17   ;;  %s808_s16 = sphi %s853_s16, %s934_s16   ;;  %s804_s15 = sphi %s851_s15, %s933_s15  }
   0x4   : > { %p38_p0 = scmp.ge.s32.totalorder %s36_s20, 4  ;;  %p700_p1 = scmp.ge.s32.totalorder %s820_s19, 1 }
   0x5   : > { %p255_p2 = scmp.lt.s32.totalorder %s820_s19, 9 }
   0x6   : > { %s938_s20 = smov (%p38_p0, %s36_s20), 0  ;;  %s940_s21 = smov (!%p38_p0, %s40_s21), %s816_s18 }
   0x7   : > { %p256_p3 = pnand %p700_p1, %p255_p2  ;;  %p42_p4 = scmp.ge.s32.totalorder %s940_s21, 2 }
   0x8   : > { %p321_p5 = scmp.lt.s32.totalorder (!%p256_p3), %s808_s16, 1  ;;  %p323_p6 = scmp.lt.s32.totalorder (!%p256_p3), %s804_s15, 3 }
   0x9   : > { %s942_s21 = smov (%p42_p4, %s940_s21), 0  ;;  %259 = sbr.rel (%p256_p3) target bundleno = 800 (0x320), region = 36 }
   0xe   : > { %vm379_vm0 = vcmask 64512   ;;  %v822_v0 = vmov 0.0   ;;  %vm823_vm1 = vmmov 0   ;;  %s944_s16 = smov (!%p321_p5, %s808_s16), 1  ;;  %s946_s15 = smov (!%p323_p6, %s804_s15), 3  ;;  %vm376_vm2 = vcmask 7168  }
   0xf   : > { %718 = vmatprep.subr.bf16.mxu0 %v822_v0  ;;  %380 = vst.msk [vmem:[#allocation4] sm:$0xff] %vm379_vm0, %v822_v0  ;;  %720 = vmatprep.mubr.msk.bf16.mxu0 %vm823_vm1, %v822_v0  ;;  %s701_s22 = sshll.u32 %s944_s16, 2  ;;  %v824_v4 = vmov -1e+30   ;;  %s359_s7 = scalar_lea.vmem %s931_s3, %s944_s16  ;;  %v825_v13 = vmov 0   ;;  %vm475_vm3 = vcmask 1043456  }
  0x10   : > { %724 = vmatprep.subr.bf16.mxu1 %v822_v0  ;;  %726 = vmatprep.mubr.msk.bf16.mxu1 %vm823_vm1, %v822_v0  ;;  %s329_s23 = sadd.s32 %s701_s22, %s946_s15  ;;  %377 = vst.msk [vmem:[#allocation2] sm:$0xff] %vm376_vm2, %v824_v4  ;;  %378 = vst.msk [vmem:[#allocation3] sm:$0xff] %vm376_vm2, %v822_v0  ;;  %v710_v6 = vld [vmem:[%s359_s7] ss:$0 sm:$0xff]  ;;  %vm535_vm4 = vcmask 60416  }
  0x11   : > { %s882_s24 = sshll.u32 %s329_s23, 2  ;;  %774 = vset.pattern.permute.xlu0 %v825_v13  ;;  %775 = vset.pattern.permute.xlu1 %v825_v13 }
  0x12   : > { %s342_s27 = scalar_lea.vmem %s929_s1, %s882_s24  ;;  %s331_s30 = scalar_lea.vmem %s928_s0, %s882_s24 }
  0x13   : > { %v382_v1 = vld [vmem:[%s342_s27] sm:$0xf]  ;;  %s353_s10 = scalar_lea.vmem %s930_s2, %s882_s24  ;;  %s370_s13 = scalar_lea.vmem %s932_s4, %s882_s24 }
  0x14   : > { %v389_v2 = vsel %vm379_vm0, %v382_v1, 0  ;;  %v381_v3 = vld [vmem:[%s331_s30] sm:$0xf] }
  0x15   : > { %719 = vmatpush3.bf16.xpose.msra.mxu0 %v389_v2  ;;  %v383_v18 = vld [vmem:[%s353_s10] sm:$0xf] }
  0x16   : > { %v477_v19 = vsel %vm475_vm3, %v383_v18, 0  ;;  %v464_v34 = vld [vmem:[#allocation4] sm:$0xff] }
  0x17   : > { %v440_v14 = vld [vmem:[#allocation2] sm:$0xff]  ;;  %725 = vmatpush3.bf16.msra.mxu1 %v477_v19  ;;  %v456_v28 = vld [vmem:[#allocation3] sm:$0xff] }
  0x1c   : > { %721 = vmatmul.mubr.msk.bf16.vlgmr.msra.gmra.mxu0 %vm379_vm0, %v381_v3 }
  0xdc   : > { %v425_v5 = vpop.f32.mrf.mxu0 }
  0xdd   : > { %v431_v7 = vmul.f32 0.35355338, %v425_v5 }
  0xde   : > { %v722_v8 = vpop.f32.mrf.mxu0 }
  0xdf   : > { %v439_v9 = vadd.f32 %v710_v6, %v431_v7 }
  0xe0   : > { %v428_v10 = vpop.f32.mrf.mxu0 }
  0xe1   : > { %v441_v11 = vsel %vm379_vm0, %v439_v9, -inf }
  0xe2   : > { %442 = vmax.xlane.f32.xlu0 %v441_v11  ;;  %v723_v12 = vpop.f32.mrf.mxu0 }
 0x16b   : > { %v443_v15 = vpop.xlane.xlu0 %442 }
 0x16c   : > { %v444_v16 = vmax.f32 %v440_v14, %v443_v15 }
 0x16e   : > { %v445_v17 = vsub.f32 %v440_v14, %v444_v16  ;;  %521 = vst.msk [vmem:[#allocation2] sm:$0xff] %vm376_vm2, %v444_v16  ;;  %450 = vperm.xlu0 %774, %v444_v16  }
 0x170   : > { %v446_v24 = vmul.f32 1.442695, %v445_v17 }
 0x1e9   : > { %v451_v20 = vpop.permute.xlu0 %450 }
 0x1ea   : > { %v453_v21 = vsub.f32 %v439_v9, %v451_v20 }
 0x1ec   : > { %v454_v22 = vmul.f32 1.442695, %v453_v21 }
 0x1ee   : > { %776 = vpow2.f32 %v454_v22 }
 0x1ef   : > { %778 = vpow2.f32 %v446_v24 }
 0x1fb   : > { %v777_v23 = vpop.eup %776 }
 0x1fc   : > { %v458_v25 = vsel %vm379_vm0, %v777_v23, 0.0  ;;  %v471_v26 = vpack.c.bf16 %v777_v23, %v777_v23  ;;  %v779_v27 = vpop.eup %778 }
 0x1fd   : > { %459 = vadd.xlane.f32.xlu1 %v458_v25  ;;  %v457_v29 = vmul.f32 %v779_v27, %v456_v28 }
 0x1fe   : > { %727 = vmatmul.mubr.msk.bf16.vlgmr.msra.gmra.mxu1 %vm379_vm0, %v471_v26 }
 0x20e   : > { %467 = vperm.xlu1 %775, %v779_v27  }
 0x286   : > { %v460_v30 = vpop.xlane.xlu1 %459 }
 0x287   : > { %v461_v31 = vadd.f32 %v460_v30, %v457_v29 }
 0x289   : > { %463 = vst.msk [vmem:[#allocation3] sm:$0xff] %vm376_vm2, %v461_v31 }
 0x28a   : > { %v468_v35 = vpop.permute.xlu1 %467 }
 0x28b   : > { %v470_v36 = vmul.f32 %v468_v35, %v464_v34 }
 0x290   : > { %v526_v32 = vld [vmem:[#allocation3] sm:$0xff] }
 0x291   : > { %780 = vrcp.f32 %v526_v32 }
 0x29e   : > { %v781_v33 = vpop.eup %780 }
 0x29f   : > { %530 = vperm.xlu1 %775, %v781_v33  }
 0x2be   : > { %v513_v37 = vpop.f32.mrf.mxu1 }
 0x2bf   : > { %v519_v38 = vadd.f32 %v513_v37, %v470_v36 }
 0x2c0   : > { %v728_v39 = vpop.f32.mrf.mxu1 }
 0x2c1   : > { %520 = vst.msk [vmem:[#allocation4] sm:$0xff] %vm379_vm0, %v519_v38 }
 0x2c2   : > { %v516_v40 = vpop.f32.mrf.mxu1 }
 0x2c4   : > { %v729_v41 = vpop.f32.mrf.mxu1 }
 0x2c8   : > { %v525_v42 = vld [vmem:[#allocation4] sm:$0xff] }
 0x31a   : > { %v531_v43 = vpop.permute.xlu1 %530 }
 0x31b   : > { %v533_v44 = vmul.f32 %v531_v43, %v525_v42 }
 0x31d   : > { %v534_v45 = vpack.c.bf16 %v533_v44, %v533_v44 }
 0x31f   : > { %536 = vst.msk [vmem:[%s370_s13] sm:$0xf] %vm535_vm4, %v534_v45 }
 0x320 PF: > { %s14_s19 = sadd.s32 1, %s820_s19   ;;  %s933_s15 = smov %s812_s17 }
 0x321   : > { %p11_p7 = scmp.ge.s32.totalorder %s14_s19, 10   ;;  %s934_s16 = smov %s816_s18 }
 0x322   : > { %s935_s17 = smov %s938_s20  ;;  %s936_s18 = smov %s942_s21 }
 0x323   :  { %13 = sbr.rel (!%p11_p7) target bundleno = 3 (0x3), region = 83 }

// kernel: stsb_forward.17
= control target key start
LH: loop header
LB: loop body
LE: loop exit
PB: predicated region body
PF: predicated region fallthrough
CT: control target
= control target key end

     0   :  { %vm28_vm0 = vcmask 261120   ;;  %v220_v0 = vmov 0.0   ;;  %vm221_vm1 = vmmov 0   ;;  %vm178_vm2 = vcmask 257024   ;;  %s293_s1 = inlined_call_operand.vmem [shape: bf16[32,32], index: 1, kind: input, shape index: {}]   ;;  %s294_s0 = inlined_call_operand.vmem [shape: bf16[16,32], index: 0, kind: input, shape index: {}]   ;;  %s295_s3 = inlined_call_operand.vmem [shape: bf16[16,32], index: 3, kind: input, shape index: {}]   ;;  %s296_s2 = inlined_call_operand.vmem [shape: f32[1,32], index: 2, kind: input, shape index: {}]   ;;  %s297_s4 = inlined_call_operand.vmem [shape: f32[1,32], index: 4, kind: input, shape index: {}]   ;;  %s298_s5 = inlined_call_operand.vmem [shape: f32[1,32], index: 5, kind: input, shape index: {}]   ;;  %s299_s6 = inlined_call_operand.vmem [shape: bf16[16,32], index: 6, kind: output, shape index: {}]  }
   0x1   :  { %203 = vmatprep.subr.bf16.mxu0 %v220_v0  ;;  %v213_v1 = vld [vmem:[%s293_s1 + $0x8] sm:$0xff]   ;;  %207 = vmatprep.mubr.msk.bf16.mxu0 %vm221_vm1, %v220_v0  ;;  %29 = vst.msk [vmem:[#allocation2] sm:$0xff] %vm28_vm0, %v220_v0  ;;  %30 = vst.msk [vmem:[#allocation2 + $0x8] sm:$0xff] %vm28_vm0, %v220_v0  ;;  %v214_v2 = vld [vmem:[%s293_s1] sm:$0xff]  }
   0x2   :  { %204 = vmatpush3.bf16.msra.mxu0 %v213_v1  ;;  %v215_v3 = vld [vmem:[%s294_s0] sm:$0xff]  }
   0x3   :  { %205 = vmatprep.subr.bf16.mxu0 %v220_v0  ;;  %v197_v12 = vld [vmem:[%s295_s3] sm:$0xff]  }
   0x4   :  { %v189_v13 = vld [vmem:[%s296_s2] ss:$0 sm:$0xff]  ;;  %v198_v14 = vunpack.c.l.bf16 %v197_v12  ;;  %v199_v18 = vunpack.c.h.bf16 %v197_v12 }
   0x5   :  { %v190_v41 = vld [vmem:[%s297_s4] ss:$0 sm:$0xff] }
   0x6   :  { %206 = vmatpush3.bf16.msra.mxu0 %v214_v2  ;;  %v191_v43 = vld [vmem:[%s298_s5] ss:$0 sm:$0xff] }
   0x8   :  { %v31_v4 = vld [vmem:[#allocation2] sm:$0xff]  ;;  %v32_v8 = vld [vmem:[#allocation2 + $0x8] sm:$0xff] }
   0x9   :  { %208 = vmatmul.mubr.msk.bf16.vlgmr.msra.gmra.mxu0 %vm28_vm0, %v215_v3 }
  0xc9   :  { %v94_v5 = vpop.f32.mrf.mxu0 }
  0xca   :  { %v101_v6 = vadd.f32 %v94_v5, %v31_v4 }
  0xcb   :  { %v209_v7 = vpop.f32.mrf.mxu0 }
  0xcc   :  { %103 = vst.msk [vmem:[#allocation2] sm:$0xff] %vm28_vm0, %v101_v6 }
  0xcd   :  { %v97_v9 = vpop.f32.mrf.mxu0 }
  0xce   :  { %v102_v10 = vadd.f32 %v97_v9, %v32_v8 }
  0xcf   :  { %v210_v11 = vpop.f32.mrf.mxu0 }
  0xd0   :  { %104 = vst.msk [vmem:[#allocation2 + $0x8] sm:$0xff] %vm28_vm0, %v102_v10 }
  0xd3   :  { %v108_v15 = vld [vmem:[#allocation2] sm:$0xff] }
  0xd4   :  { %v117_v16 = vadd.f32 %v189_v13, %v108_v15 }
  0xd6   :  { %v123_v17 = vadd.f32 %v198_v14, %v117_v16 }
  0xd7   :  { %v109_v19 = vld [vmem:[#allocation2 + $0x8] sm:$0xff] }
  0xd8   :  { %v125_v20 = vsel %vm28_vm0, %v123_v17, 0.0  ;;  %v118_v21 = vadd.f32 %v189_v13, %v109_v19 }
  0xd9   :  { %126 = vadd.xlane.f32.xlu0 %v125_v20 }
  0xda   :  { %v124_v22 = vadd.f32 %v199_v18, %v118_v21 }
  0xdc   :  { %v128_v23 = vsel %vm28_vm0, %v124_v22, 0.0 }
  0xdd   :  { %129 = vadd.xlane.f32.xlu0 %v128_v23 }
 0x162   :  { %v127_v24 = vpop.xlane.xlu0 %126 }
 0x163   :  { %v132_v25 = vmul.f32 0.03125, %v127_v24 }
 0x165   :  { %v134_v26 = vsub.f32 %v123_v17, %v132_v25 }
 0x166   :  { %v130_v27 = vpop.xlane.xlu0 %129 }
 0x167   :  { %v133_v28 = vmul.f32 0.03125, %v130_v27  ;;  %v136_v29 = vmul.f32 %v134_v26, %v134_v26 }
 0x169   :  { %v135_v30 = vsub.f32 %v124_v22, %v133_v28  ;;  %v138_v31 = vsel %vm28_vm0, %v136_v29, 0.0 }
 0x16a   :  { %139 = vadd.xlane.f32.xlu1 %v138_v31 }
 0x16b   :  { %v137_v32 = vmul.f32 %v135_v30, %v135_v30 }
 0x16d   :  { %v141_v33 = vsel %vm28_vm0, %v137_v32, 0.0 }
 0x16e   :  { %142 = vadd.xlane.f32.xlu1 %v141_v33 }
 0x1f3   :  { %v140_v34 = vpop.xlane.xlu1 %139 }
 0x1f4   :  { %v144_v35 = vmul.f32 0.03125, %v140_v34 }
 0x1f6   :  { %v146_v36 = vadd.f32 1e-12, %v144_v35 }
 0x1f7   :  { %v143_v37 = vpop.xlane.xlu1 %142 }
 0x1f8   :  { %216 = vrsqrt.f32 %v146_v36  ;;  %v145_v38 = vmul.f32 0.03125, %v143_v37 }
 0x1fa   :  { %v147_v39 = vadd.f32 1e-12, %v145_v38 }
 0x1fc   :  { %218 = vrsqrt.f32 %v147_v39 }
 0x205   :  { %v217_v40 = vpop.eup %216 }
 0x206   :  { %v150_v42 = vmul.f32 %v217_v40, %v134_v26 }
 0x208   :  { %v159_v44 = vmul.f32 %v190_v41, %v150_v42 }
 0x209   :  { %v219_v45 = vpop.eup %218 }
 0x20a   :  { %v168_v46 = vadd.f32 %v191_v43, %v159_v44  ;;  %v151_v47 = vmul.f32 %v219_v45, %v135_v30 }
 0x20c   :  { %v194_v48 = vpack.c.bf16 %v168_v46, %v168_v46  ;;  %v160_v49 = vmul.f32 %v190_v41, %v151_v47 }
 0x20e   :  { %179 = vst.msk [vmem:[%s299_s6] sm:$0xf] %vm178_vm2, %v194_v48  ;;  %v169_v50 = vadd.f32 %v191_v43, %v160_v49 }
 0x210   :  { %v195_v51 = vpack.c.bf16 %v169_v50, %v169_v50 }
 0x212   :  { %180 = vst.msk [vmem:[%s299_s6 + $0x4] sm:$0xf] %vm178_vm2, %v195_v51 }

// kernel: stsb_forward.18
= control target key start
LH: loop header
LB: loop body
LE: loop exit
PB: predicated region body
PF: predicated region fallthrough
CT: control target
= control target key end

     0   :  { %vm19_vm0 = vcmask 523264   ;;  %v173_v0 = vmov 0.0   ;;  %vm174_vm1 = vmmov 0   ;;  %vm47_vm2 = vcmask 261120   ;;  %s217_s1 = inlined_call_operand.vmem [shape: bf16[32,64], index: 1, kind: input, shape index: {}]   ;;  %s218_s0 = inlined_call_operand.vmem [shape: bf16[16,32], index: 0, kind: input, shape index: {}]   ;;  %s219_s2 = inlined_call_operand.vmem [shape: f32[1,64], index: 2, kind: input, shape index: {}]   ;;  %s220_s3 = inlined_call_operand.vmem [shape: bf16[16,64], index: 3, kind: output, shape index: {}]  }
   0x1   :  { %156 = vmatprep.subr.bf16.mxu0 %v173_v0  ;;  %v166_v1 = vld [vmem:[%s217_s1 + $0x8] sm:$0xff]   ;;  %160 = vmatprep.mubr.msk.bf16.mxu0 %vm174_vm1, %v173_v0  ;;  %20 = vst.msk [vmem:[#allocation2] sm:$0xff] %vm19_vm0, %v173_v0  ;;  %21 = vst.msk [vmem:[#allocation2 + $0x8] sm:$0xff] %vm19_vm0, %v173_v0  ;;  %v167_v2 = vld [vmem:[%s217_s1] sm:$0xff]   ;;  %vm137_vm3 = vcmask 519168  }
   0x2   :  { %157 = vmatpush3.bf16.msra.mxu0 %v166_v1  ;;  %v168_v3 = vld [vmem:[%s218_s0] sm:$0xff]  }
   0x3   :  { %158 = vmatprep.subr.bf16.mxu0 %v173_v0  ;;  %v148_v12 = vld [vmem:[%s219_s2] ss:$0 sm:$0xff] }
   0x6   :  { %159 = vmatpush3.bf16.msra.mxu0 %v167_v2 }
   0x8   :  { %v22_v4 = vld [vmem:[#allocation2] sm:$0xff]  ;;  %v23_v8 = vld [vmem:[#allocation2 + $0x8] sm:$0xff] }
   0x9   :  { %161 = vmatmul.mubr.msk.bf16.vlgmr.msra.gmra.mxu0 %vm47_vm2, %v168_v3 }
  0xc9   :  { %v85_v5 = vpop.f32.mrf.mxu0 }
  0xca   :  { %v92_v6 = vadd.f32 %v85_v5, %v22_v4 }
  0xcb   :  { %v162_v7 = vpop.f32.mrf.mxu0 }
  0xcc   :  { %95 = vst.msk [vmem:[#allocation2] sm:$0xff] %vm19_vm0, %v92_v6 }
  0xcd   :  { %v88_v9 = vpop.f32.mrf.mxu0 }
  0xce   :  { %v93_v10 = vadd.f32 %v88_v9, %v23_v8 }
  0xcf   :  { %v163_v11 = vpop.f32.mrf.mxu0 }
  0xd0   :  { %96 = vst.msk [vmem:[#allocation2 + $0x8] sm:$0xff] %vm19_vm0, %v93_v10 }
  0xd3   :  { %v100_v13 = vld [vmem:[#allocation2] sm:$0xff] }
  0xd4   :  { %v109_v14 = vadd.f32 %v148_v12, %v100_v13 }
  0xd6   :  { %v111_v15 = vmul.f32 %v109_v14, %v109_v14 }
  0xd7   :  { %v101_v16 = vld [vmem:[#allocation2 + $0x8] sm:$0xff] }
  0xd8   :  { %v113_v17 = vmul.f32 %v111_v15, %v109_v14  ;;  %v110_v18 = vadd.f32 %v148_v12, %v101_v16 }
  0xda   :  { %v115_v19 = vmul.f32 0.044715, %v113_v17  ;;  %v112_v20 = vmul.f32 %v110_v18, %v110_v18 }
  0xdc   :  { %v117_v21 = vadd.f32 %v115_v19, %v109_v14  ;;  %v114_v22 = vmul.f32 %v112_v20, %v110_v18 }
  0xde   :  { %v119_v23 = vmul.f32 0.7978846, %v117_v21  ;;  %v116_v24 = vmul.f32 0.044715, %v114_v22 }
  0xe0   :  { %169 = vtanh.f32 %v119_v23  ;;  %v118_v25 = vadd.f32 %v116_v24, %v110_v18 }
  0xe2   :  { %v120_v26 = vmul.f32 0.7978846, %v118_v25 }
  0xe4   :  { %171 = vtanh.f32 %v120_v26 }
  0xed   :  { %v170_v27 = vpop.eup %169 }
  0xee   :  { %v123_v28 = vadd.f32 1.0, %v170_v27 }
  0xf0   :  { %v125_v29 = vmul.f32 0.5, %v123_v28 }
  0xf1   :  { %v172_v30 = vpop.eup %171 }
  0xf2   :  { %v127_v31 = vmul.f32 %v125_v29, %v109_v14  ;;  %v124_v32 = vadd.f32 1.0, %v172_v30 }
  0xf4   :  { %v151_v33 = vpack.c.bf16 %v127_v31, %v127_v31  ;;  %v126_v34 = vmul.f32 0.5, %v124_v32 }
  0xf6   :  { %138 = vst.msk [vmem:[%s220_s3] sm:$0xf] %vm137_vm3, %v151_v33  ;;  %v128_v35 = vmul.f32 %v126_v34, %v110_v18 }
  0xf8   :  { %v152_v36 = vpack.c.bf16 %v128_v35, %v128_v35 }
  0xfa   :  { %139 = vst.msk [vmem:[%s220_s3 + $0x4] sm:$0xf] %vm137_vm3, %v152_v36 }

// kernel: stsb_forward.19
= control target key start
LH: loop header
LB: loop body
LE: loop exit
PB: predicated region body
PF: predicated region fallthrough
CT: control target
= control target key end

     0   :  { %vm28_vm0 = vcmask 261120   ;;  %v247_v0 = vmov 0.0   ;;  %vm248_vm1 = vmmov 0   ;;  %vm72_vm2 = vcmask 523264   ;;  %s325_s1 = inlined_call_operand.vmem [shape: bf16[64,32], index: 1, kind: input, shape index: {}]   ;;  %s326_s0 = inlined_call_operand.vmem [shape: bf16[16,64], index: 0, kind: input, shape index: {}]   ;;  %s327_s3 = inlined_call_operand.vmem [shape: bf16[16,32], index: 3, kind: input, shape index: {}]   ;;  %s328_s2 = inlined_call_operand.vmem [shape: f32[1,32], index: 2, kind: input, shape index: {}]   ;;  %s329_s4 = inlined_call_operand.vmem [shape: f32[1,32], index: 4, kind: input, shape index: {}]   ;;  %s330_s5 = inlined_call_operand.vmem [shape: f32[1,32], index: 5, kind: input, shape index: {}]   ;;  %s331_s6 = inlined_call_operand.vmem [shape: bf16[16,32], index: 6, kind: output, shape index: {}]  }
   0x1   :  { %224 = vmatprep.subr.bf16.mxu0 %v247_v0  ;;  %v238_v1 = vld [vmem:[%s325_s1 + $0x18] sm:$0xff]   ;;  %232 = vmatprep.mubr.msk.bf16.mxu0 %vm248_vm1, %v247_v0  ;;  %29 = vst.msk [vmem:[#allocation2] sm:$0xff] %vm28_vm0, %v247_v0  ;;  %30 = vst.msk [vmem:[#allocation2 + $0x8] sm:$0xff] %vm28_vm0, %v247_v0  ;;  %v239_v2 = vld [vmem:[%s325_s1 + $0x10] sm:$0xff]   ;;  %vm195_vm3 = vcmask 257024  }
   0x2   :  { %225 = vmatpush3.bf16.msra.mxu0 %v238_v1  ;;  %v240_v3 = vld [vmem:[%s325_s1 + $0x8] sm:$0xff]   ;;  %v241_v4 = vld [vmem:[%s325_s1] sm:$0xff]  }
   0x3   :  { %226 = vmatprep.subr.bf16.mxu0 %v247_v0  ;;  %v242_v5 = vld [vmem:[%s326_s0] sm:$0xff]  }
   0x4   :  { %v216_v14 = vld [vmem:[%s327_s3] sm:$0xff]  }
   0x5   :  { %v208_v15 = vld [vmem:[%s328_s2] ss:$0 sm:$0xff]  ;;  %v217_v16 = vunpack.c.l.bf16 %v216_v14  ;;  %v218_v20 = vunpack.c.h.bf16 %v216_v14 }
   0x6   :  { %227 = vmatpush3.bf16.msra.mxu0 %v239_v2  ;;  %v209_v43 = vld [vmem:[%s329_s4] ss:$0 sm:$0xff] }
   0x7   :  { %228 = vmatprep.subr.bf16.mxu0 %v247_v0  ;;  %v210_v45 = vld [vmem:[%s330_s5] ss:$0 sm:$0xff] }
   0x8   :  { %v31_v6 = vld [vmem:[#allocation2] sm:$0xff]  ;;  %v32_v10 = vld [vmem:[#allocation2 + $0x8] sm:$0xff] }
   0xa   :  { %229 = vmatpush3.bf16.msra.mxu0 %v240_v3 }
   0xb   :  { %230 = vmatprep.subr.bf16.mxu0 %v247_v0 }
   0xe   :  { %231 = vmatpush3.bf16.msra.mxu0 %v241_v4 }
  0x11   :  { %233 = vmatmul.mubr.msk.bf16.vlgmr.msra.gmra.mxu0 %vm72_vm2, %v242_v5 }
  0xd1   :  { %v110_v7 = vpop.f32.mrf.mxu0 }
  0xd2   :  { %v117_v8 = vadd.f32 %v110_v7, %v31_v6 }
  0xd3   :  { %v234_v9 = vpop.f32.mrf.mxu0 }
  0xd4   :  { %120 = vst.msk [vmem:[#allocation2] sm:$0xff] %vm28_vm0, %v117_v8 }
  0xd5   :  { %v113_v11 = vpop.f32.mrf.mxu0 }
  0xd6   :  { %v118_v12 = vadd.f32 %v113_v11, %v32_v10 }
  0xd7   :  { %v235_v13 = vpop.f32.mrf.mxu0 }
  0xd8   :  { %121 = vst.msk [vmem:[#allocation2 + $0x8] sm:$0xff] %vm28_vm0, %v118_v12 }
  0xdb   :  { %v125_v17 = vld [vmem:[#allocation2] sm:$0xff] }
  0xdc   :  { %v134_v18 = vadd.f32 %v208_v15, %v125_v17 }
  0xde   :  { %v140_v19 = vadd.f32 %v217_v16, %v134_v18 }
  0xdf   :  { %v126_v21 = vld [vmem:[#allocation2 + $0x8] sm:$0xff] }
  0xe0   :  { %v142_v22 = vsel %vm28_vm0, %v140_v19, 0.0  ;;  %v135_v23 = vadd.f32 %v208_v15, %v126_v21 }
  0xe1   :  { %143 = vadd.xlane.f32.xlu0 %v142_v22 }
  0xe2   :  { %v141_v24 = vadd.f32 %v218_v20, %v135_v23 }
  0xe4   :  { %v145_v25 = vsel %vm28_vm0, %v141_v24, 0.0 }
  0xe5   :  { %146 = vadd.xlane.f32.xlu0 %v145_v25 }
 0x16a   :  { %v144_v26 = vpop.xlane.xlu0 %143 }
 0x16b   :  { %v149_v27 = vmul.f32 0.03125, %v144_v26 }
 0x16d   :  { %v151_v28 = vsub.f32 %v140_v19, %v149_v27 }
 0x16e   :  { %v147_v29 = vpop.xlane.xlu0 %146 }
 0x16f   :  { %v150_v30 = vmul.f32 0.03125, %v147_v29  ;;  %v153_v31 = vmul.f32 %v151_v28, %v151_v28 }
 0x171   :  { %v152_v32 = vsub.f32 %v141_v24, %v150_v30  ;;  %v155_v33 = vsel %vm28_vm0, %v153_v31, 0.0 }
 0x172   :  { %156 = vadd.xlane.f32.xlu1 %v155_v33 }
 0x173   :  { %v154_v34 = vmul.f32 %v152_v32, %v152_v32 }
 0x175   :  { %v158_v35 = vsel %vm28_vm0, %v154_v34, 0.0 }
 0x176   :  { %159 = vadd.xlane.f32.xlu1 %v158_v35 }
 0x1fb   :  { %v157_v36 = vpop.xlane.xlu1 %156 }
 0x1fc   :  { %v161_v37 = vmul.f32 0.03125, %v157_v36 }
 0x1fe   :  { %v163_v38 = vadd.f32 1e-12, %v161_v37 }
 0x1ff   :  { %v160_v39 = vpop.xlane.xlu1 %159 }
 0x200   :  { %243 = vrsqrt.f32 %v163_v38  ;;  %v162_v40 = vmul.f32 0.03125, %v160_v39 }
 0x202   :  { %v164_v41 = vadd.f32 1e-12, %v162_v40 }
 0x204   :  { %245 = vrsqrt.f32 %v164_v41 }
 0x20d   :  { %v244_v42 = vpop.eup %243 }
 0x20e   :  { %v167_v44 = vmul.f32 %v244_v42, %v151_v28 }
 0x210   :  { %v176_v46 = vmul.f32 %v209_v43, %v167_v44 }
 0x211   :  { %v246_v47 = vpop.eup %245 }
 0x212   :  { %v185_v48 = vadd.f32 %v210_v45, %v176_v46  ;;  %v168_v49 = vmul.f32 %v246_v47, %v152_v32 }
 0x214   :  { %v213_v50 = vpack.c.bf16 %v185_v48, %v185_v48  ;;  %v177_v51 = vmul.f32 %v209_v43, %v168_v49 }
 0x216   :  { %196 = vst.msk [vmem:[%s331_s6] sm:$0xf] %vm195_vm3, %v213_v50  ;;  %v186_v52 = vadd.f32 %v210_v45, %v177_v51 }
 0x218   :  { %v214_v53 = vpack.c.bf16 %v186_v52, %v186_v52 }
 0x21a   :  { %197 = vst.msk [vmem:[%s331_s6 + $0x4] sm:$0xf] %vm195_vm3, %v214_v53 }

// kernel: stsb_forward.25
= control target key start
LH: loop header
LB: loop body
LE: loop exit
PB: predicated region body
PF: predicated region fallthrough
CT: control target
= control target key end

     0   :  { %vm19_vm0 = vcmask 254976   ;;  %v127_v0 = vmov 0.0   ;;  %vm128_vm1 = vmmov 0   ;;  %vm39_vm2 = vcmask 261120   ;;  %s166_s1 = inlined_call_operand.vmem [shape: bf16[32,32], index: 1, kind: input, shape index: {}]   ;;  %s167_s0 = inlined_call_operand.vmem [shape: bf16[2,32], index: 0, kind: input, shape index: {}]   ;;  %s168_s2 = inlined_call_operand.vmem [shape: f32[1,32], index: 2, kind: input, shape index: {}]   ;;  %s169_s3 = inlined_call_operand.vmem [shape: bf16[2,32], index: 3, kind: output, shape index: {}]  }
   0x1   :  { %20 = vst.msk [vmem:[#allocation2] sm:$0x3] %vm19_vm0, %v127_v0  ;;  %113 = vmatprep.subr.bf16.mxu0 %v127_v0  ;;  %v123_v1 = vld [vmem:[%s166_s1 + $0x8] sm:$0xff]   ;;  %117 = vmatprep.mubr.msk.bf16.mxu0 %vm128_vm1, %v127_v0  ;;  %v124_v2 = vld [vmem:[%s166_s1] sm:$0xff]   ;;  %vm100_vm3 = vcmask 253952  }
   0x2   :  { %114 = vmatpush3.bf16.msra.mxu0 %v123_v1  ;;  %v22_v3 = vld [vmem:[%s167_s0] sm:$0x1] }
   0x3   :  { %115 = vmatprep.subr.bf16.mxu0 %v127_v0  ;;  %v109_v10 = vld [vmem:[%s168_s2] ss:$0 sm:$0xff] }
   0x6   :  { %116 = vmatpush3.bf16.msra.mxu0 %v124_v2 }
   0x8   :  { %v21_v4 = vld [vmem:[#allocation2] sm:$0x3] }
   0x9   :  { %118 = vmatmul.mubr.msk.bf16.vlgmr.msra.gmra.mxu0 %vm39_vm2, %v22_v3 }
  0xc9   :  { %v77_v5 = vpop.f32.mrf.mxu0 }
  0xca   :  { %v83_v6 = vadd.f32 %v77_v5, %v21_v4 }
  0xcb   :  { %v119_v7 = vpop.f32.mrf.mxu0 }
  0xcc   :  { %85 = vst.msk [vmem:[#allocation2] sm:$0x3] %vm19_vm0, %v83_v6 }
  0xcd   :  { %v80_v8 = vpop.f32.mrf.mxu0 }
  0xcf   :  { %v120_v9 = vpop.f32.mrf.mxu0 }
  0xd3   :  { %v89_v11 = vld [vmem:[#allocation2] sm:$0x3] }
  0xd4   :  { %v97_v12 = vadd.f32 %v109_v10, %v89_v11 }
  0xd6   :  { %125 = vtanh.f32 %v97_v12 }
  0xe3   :  { %v126_v13 = vpop.eup %125 }
  0xe4   :  { %v99_v14 = vpack.c.bf16 %v126_v13, %v126_v13 }
  0xe6   :  { %101 = vst.msk [vmem:[%s169_s3] sm:$0x1] %vm100_vm3, %v99_v14 }

// kernel: stsb_forward.27
= control target key start
LH: loop header
LB: loop body
LE: loop exit
PB: predicated region body
PF: predicated region fallthrough
CT: control target
= control target key end

     0   :  { %s96_s0 = inlined_call_operand.vmem [shape: f32[2,1], index: 0, kind: input, shape index: {}]   ;;  %s97_s1 = inlined_call_operand.vmem [shape: f32[2,1], index: 1, kind: input, shape index: {}]   ;;  %s98_s2 = inlined_call_operand.hbm [shape: f32[1,1], index: 2, kind: output, shape index: {}]  }
   0x1   :  { %v12_v0 = vld [vmem:[%s96_s0] sm:$0x3] }
   0x2   :  { %v13_v1 = vld [vmem:[%s97_s1] sm:$0x3] }
   0x3   :  { %v14_v2 = vsub.f32 %v12_v0, %v13_v1 }
   0x4   :  { %7 = vsyncpa [#allocation3], 0  ;;  %vm16_vm0 = vcmask 1024   ;;  %s71_s13 = smov [#allocation2]   ;;  %vm30_vm1 = vcmask 0  }
   0x5   :  { %v15_v3 = vmul.f32 %v14_v2, %v14_v2  ;;  %s38_s0 = sshll.u32 %s71_s13, 4  ;;  %s39_s0 = int_to_ptr.vmem [resolvable:$true] %s38_s0 }
   0x6   :  { %s49_s1 = scalar_lea.vmem %s39_s0, 16  ;;  %s53_s15 = scalar_lea.vmem %s39_s0, 32 }
   0x7   :  { %v17_v4 = vsel %vm16_vm0, %v15_v3, 0.0  ;;  %p50_p0 = scmp.ne.s32.totalorder %s39_s0, %s49_s1  ;;  %p54_p1 = scmp.lt.s32.totalorder %s39_s0, %s39_s0 }
   0x8   :  { %18 = vadd.xlane.f32.xlu0 %v17_v4  ;;  %p55_p2 = scmp.lt.s32.totalorder %s53_s15, %s49_s1 }
   0xa   :  { %p56_p3 = por %p55_p2, %p54_p1 }
   0xc   :  { %p57_p4 = pnand %p56_p3, %p50_p0 }
  0x91   :  { %v19_v5 = vpop.xlane.xlu0 %18 }
  0x92   :  { %v20_v6 = vrot.slane %v19_v5, 4 }
  0x94   :  { %v21_v7 = vadd.f32 %v20_v6, %v19_v5 }
  0x96   :  { %v22_v8 = vrot.slane %v21_v7, 2 }
  0x98   :  { %v23_v9 = vadd.f32 %v22_v8, %v21_v7 }
  0x9a   :  { %v24_v10 = vrot.slane %v23_v9, 1 }
  0x9c   :  { %v25_v11 = vadd.f32 %v24_v10, %v23_v9 }
  0x9e   :  { %46 = vpush %v25_v11 }
  0xcf   :  { %s47_s14 = spop %46 }
  0xd0   :  { %v27_v12 = vstv %s47_s14 }
  0xd1   :  { %v29_v13 = vmul.f32 0.5, %v27_v12 }
  0xd3   :  { %31 = vst.msk [vmem:[#allocation2] sm:$0x1] %vm30_vm1, %v29_v13 }
  0xd4   :  { %60 = shalt.err (!%p57_p4)
}
  0xd5   :  { %41 = dma.vmem_to_hbm [thread:$0]  %s39_s0, 16, %s98_s2, [#allocation3]  }
  0xd6   :  { %69 = dma.done.wait [#allocation3], 16  }
  0xd7   :  { %70 = vsyncadd [#allocation3], 4294967280 }
  0xd8   :  { %45 = vsyncpa [#allocation3], 1 }

// kernel: stsb_forward.26
= control target key start
LH: loop header
LB: loop body
LE: loop exit
PB: predicated region body
PF: predicated region fallthrough
CT: control target
= control target key end

     0   :  { %vm21_vm0 = vcmask 1024   ;;  %v124_v0 = vmov 0.0   ;;  %vm125_vm1 = vmmov 0   ;;  %vm41_vm2 = vcmask 261120   ;;  %s164_s1 = inlined_call_operand.vmem [shape: bf16[32,1], index: 1, kind: input, shape index: {}]   ;;  %s165_s2 = inlined_call_operand.<no memory space> [shape: f32[1,1], index: 2, kind: input, shape index: {}]   ;;  %s166_s0 = inlined_call_operand.vmem [shape: bf16[2,32], index: 0, kind: input, shape index: {}]   ;;  %s167_s3 = inlined_call_operand.vmem [shape: f32[2,1], index: 3, kind: output, shape index: {}]  }
   0x1   :  { %22 = vst.msk [vmem:[#allocation2] sm:$0x3] %vm21_vm0, %v124_v0  ;;  %112 = vmatprep.subr.bf16.mxu0 %v124_v0  ;;  %v122_v1 = vld [vmem:[%s164_s1 + $0x8] sm:$0xff]   ;;  %116 = vmatprep.mubr.msk.bf16.mxu0 %vm125_vm1, %v124_v0  ;;  %v8_v2 = vstv %s165_s2  ;;  %v123_v3 = vld [vmem:[%s164_s1] sm:$0xff]  }
   0x2   :  { %9 = vst [vmem:[#allocation3] sm:$0x1] %v8_v2  ;;  %113 = vmatpush3.bf16.msra.mxu0 %v122_v1  ;;  %v24_v4 = vld [vmem:[%s166_s0] sm:$0x1] }
   0x3   :  { %114 = vmatprep.subr.bf16.mxu0 %v124_v0 }
   0x6   :  { %115 = vmatpush3.bf16.msra.mxu0 %v123_v3 }
   0x8   :  { %v23_v5 = vld [vmem:[#allocation2] sm:$0x3] }
   0x9   :  { %117 = vmatmul.mubr.msk.bf16.vlgmr.msra.gmra.mxu0 %vm41_vm2, %v24_v4  ;;  %v108_v11 = vld [vmem:[#allocation3] ss:$0 sm:$0xff] }
  0xc9   :  { %v79_v6 = vpop.f32.mrf.mxu0 }
  0xca   :  { %v85_v7 = vadd.f32 %v79_v6, %v23_v5 }
  0xcb   :  { %v118_v8 = vpop.f32.mrf.mxu0 }
  0xcc   :  { %87 = vst.msk [vmem:[#allocation2] sm:$0x3] %vm21_vm0, %v85_v7 }
  0xcd   :  { %v82_v9 = vpop.f32.mrf.mxu0 }
  0xcf   :  { %v119_v10 = vpop.f32.mrf.mxu0 }
  0xd3   :  { %v91_v12 = vld [vmem:[#allocation2] sm:$0x3] }
  0xd4   :  { %v99_v13 = vadd.f32 %v108_v11, %v91_v12 }
  0xd6   :  { %100 = vst.msk [vmem:[%s167_s3] sm:$0x3] %vm21_vm0, %v99_v13 }

</bundles_post_ra>
